<compile_context>
chip_gen: v7x
topology: tpu7x:2x2x1
jax: 0.10.0
libtpu: 0.0.40
codegen_flags: <defaults>
</compile_context>

<pallas_src>
import functools

import jax
import jax.numpy as jnp
from jax.experimental import pallas as pl
from jax.experimental.pallas import tpu as pltpu


# ----------------------------------------------------------------------------
# Kernel
# ----------------------------------------------------------------------------
def _vae_kernel(
    x_ref, eps_ref,
    w_in_ref, b_in_ref,        # encoder FC_input             (D_in -> Hp)
    w_mv_ref, b_mv_ref,        # fused FC_mean | FC_var       (Hp   -> 2*Lp)
    w_dh_ref, b_dh_ref,        # decoder FC_hidden            (Lp   -> Hp)
    w_do_ref, b_do_ref,        # decoder FC_output            (Hp   -> D_out)
    xhat_ref, mv_ref,
    *, lat_pad,
):
    cdt = w_in_ref.dtype        # matmul input dtype (bf16 by default)

    # ---- Encoder ----
    h = jnp.dot(x_ref[...].astype(cdt), w_in_ref[...],
                preferred_element_type=jnp.float32)
    h = jnp.maximum(h + b_in_ref[...], 0.0)                       # relu

    mv = jnp.dot(h.astype(cdt), w_mv_ref[...],
                 preferred_element_type=jnp.float32)
    mv = mv + b_mv_ref[...]
    # Split at a 128-lane vreg boundary (free; no cross-lane shuffles).
    mean = mv[:, :lat_pad]
    log_var = mv[:, lat_pad:]

    # ---- Reparameterization (epsilon ~ U[0,1), matching torch.rand_like) ----
    std = jnp.exp(0.5 * log_var)
    z = mean + std * eps_ref[...]

    # ---- Decoder ----
    hd = jnp.dot(z.astype(cdt), w_dh_ref[...],
                 preferred_element_type=jnp.float32)
    hd = jnp.maximum(hd + b_dh_ref[...], 0.0)                     # relu
    logits = jnp.dot(hd.astype(cdt), w_do_ref[...],
                     preferred_element_type=jnp.float32)
    logits = logits + b_do_ref[...]
    # Exact sigmoid: exp on EUP, plain VPU divide (kernel is mem-bound; slack).
    xhat_ref[...] = 1.0 / (1.0 + jnp.exp(-logits))

    # Fused lane-dense (TILE_B, 2*Lp) output; wrapper slices mean / log_var.
    mv_ref[...] = mv


# ----------------------------------------------------------------------------
# Parameter repacking (done ONCE, outside jit -> no per-call transposes)
# ----------------------------------------------------------------------------
def _round_up(n, m):
    return ((n + m - 1) // m) * m


def prepare_params(params, dtype=jnp.bfloat16):
    """params: dict name -> (weight (out,in), bias (out,)) in PyTorch layout.

    Returns kernel-layout params:
      * weights transposed to (in, out) and cast to `dtype`
        (bf16 recommended: MXU-native on v5e/v6e/v7x, half the HBM bytes),
      * hidden dim zero-padded to a multiple of 128 (400 -> 512),
      * mean/var halves each zero-padded to 128 output lanes and fused so the
        split inside the kernel lands on a 128-lane vreg boundary,
      * decoder K-dim (latent) zero-padded to match,
      * biases kept f32 as (1, out) with zero padding.
    Zero padding is exact: ReLU keeps padded hidden lanes at 0 and the
    matching zero weight rows contribute nothing downstream.
    """
    w_in, b_in = params["FC_input"]     # (H, D_in), (H,)
    w_mu, b_mu = params["FC_mean"]      # (L, H),    (L,)
    w_lv, b_lv = params["FC_var"]       # (L, H),    (L,)
    w_dh, b_dh = params["FC_hidden"]    # (H, L),    (H,)
    w_do, b_do = params["FC_output"]    # (D_out, H),(D_out,)

    H = w_in.shape[0]
    L = w_mu.shape[0]
    Hp = _round_up(H, 128)
    Lp = _round_up(max(L, 128), 128)
    D_in = w_in.shape[1]
    D_out = w_do.shape[0]

    def t(w):                                    # torch (out,in) -> (in,out)
        return jnp.asarray(w, jnp.float32).T

    def pad2(a, rows, cols):
        return jnp.pad(a, ((0, rows - a.shape[0]), (0, cols - a.shape[1])))

    def padb(b, n):
        b = jnp.asarray(b, jnp.float32).reshape(1, -1)
        return jnp.pad(b, ((0, 0), (0, n - b.shape[1])))

    w_in_k = pad2(t(w_in), D_in, Hp)                       # (D_in, Hp)
    w_mv_k = jnp.concatenate(
        [pad2(t(w_mu), Hp, Lp), pad2(t(w_lv), Hp, Lp)], axis=1)   # (Hp, 2*Lp)
    b_mv_k = jnp.concatenate([padb(b_mu, Lp), padb(b_lv, Lp)], axis=1)
    w_dh_k = pad2(t(w_dh), Lp, Hp)                         # (Lp, Hp)
    w_do_k = pad2(t(w_do), Hp, D_out)                      # (Hp, D_out)

    return dict(
        w_in=w_in_k.astype(dtype), b_in=padb(b_in, Hp),
        w_mv=w_mv_k.astype(dtype), b_mv=b_mv_k,
        w_dh=w_dh_k.astype(dtype), b_dh=padb(b_dh, Hp),
        w_do=w_do_k.astype(dtype), b_do=padb(b_do, D_out),
    )


# ----------------------------------------------------------------------------
# Batch tiling choice
# ----------------------------------------------------------------------------
def _choose_tile(B):
    """Pick (TILE_B, n_steps) minimizing padding.

    - Small batches (< 256): one tile, padded to a multiple of 8.
    - Larger batches: at least 2 tiles so dimension_semantics=("parallel",)
      can shard across v7x's 2 TensorCores, with tiles capped near 512 rows
      (amortizes the ~0.35 us/step pipeline overhead; well inside VMEM since
      per-row activation footprint is only a few KB and weights are resident).
    """
    if B < 256:
        n_steps = 1
    else:
        n_steps = max(2, pl.cdiv(B, 512))
    tile = _round_up(pl.cdiv(B, n_steps), 8)
    return tile, n_steps


# ----------------------------------------------------------------------------
# Forward wrapper
# ----------------------------------------------------------------------------
@jax.jit
def vae_forward(x, eps, p):
    """x: [B, D_in] f32, eps: [B, L] f32 (U[0,1)), p: output of prepare_params.

    Returns (x_hat [B, D_out], mean [B, L], log_var [B, L]) in f32.
    """
    B, D_in = x.shape
    L = eps.shape[1]
    Hp = p["w_in"].shape[1]
    lat_pad = p["w_mv"].shape[1] // 2
    D_out = p["w_do"].shape[1]

    TILE_B, n_steps = _choose_tile(B)
    B_pad = TILE_B * n_steps

    # Pad batch rows; pad eps lanes to the (zero-extended) latent width so the
    # z = mean + std*eps add stays lane-aligned.  Padded latent lanes have
    # zero weights downstream, so they never affect real outputs.
    x_p = jnp.pad(x, ((0, B_pad - B), (0, 0)))
    eps_p = jnp.pad(eps, ((0, B_pad - B), (0, lat_pad - L)))

    grid = (n_steps,)

    def batch_spec(d):           # tiled over the batch (grid) axis
        return pl.BlockSpec((TILE_B, d), lambda i: (i, 0))

    def resident(arr):           # same block every step -> stays in VMEM
        return pl.BlockSpec(arr.shape, lambda i: (0, 0))

    in_specs = [
        batch_spec(D_in), batch_spec(lat_pad),
        resident(p["w_in"]), resident(p["b_in"]),
        resident(p["w_mv"]), resident(p["b_mv"]),
        resident(p["w_dh"]), resident(p["b_dh"]),
        resident(p["w_do"]), resident(p["b_do"]),
    ]
    out_specs = (batch_spec(D_out), batch_spec(2 * lat_pad))
    out_shape = (
        jax.ShapeDtypeStruct((B_pad, D_out), jnp.float32),        # x_hat
        jax.ShapeDtypeStruct((B_pad, 2 * lat_pad), jnp.float32),  # mean|log_var
    )

    # Advisory cost estimate for the XLA scheduler.
    flops = 2 * B_pad * (D_in * Hp + Hp * 2 * lat_pad + lat_pad * Hp + Hp * D_out)
    transcendentals = B_pad * (lat_pad + D_out)      # exp(std) + exp (sigmoid)
    w_bytes = sum(int(a.size) * a.dtype.itemsize for a in p.values())
    bytes_accessed = (
        int(x_p.size) * 4 + int(eps_p.size) * 4 + w_bytes
        + B_pad * (D_out + 2 * lat_pad) * 4
    )

    x_hat, mv = pl.pallas_call(
        functools.partial(_vae_kernel, lat_pad=lat_pad),
        out_shape=out_shape,
        grid=grid,
        in_specs=in_specs,
        out_specs=out_specs,
        compiler_params=pltpu.CompilerParams(
            dimension_semantics=("parallel",),
        ),
        cost_estimate=pl.CostEstimate(
            flops=flops,
            transcendentals=transcendentals,
            bytes_accessed=bytes_accessed,
        ),
    )(
        x_p, eps_p,
        p["w_in"], p["b_in"],
        p["w_mv"], p["b_mv"],
        p["w_dh"], p["b_dh"],
        p["w_do"], p["b_do"],
    )

    mean = mv[:B, :L]
    log_var = mv[:B, lat_pad:lat_pad + L]
    return x_hat[:B], mean, log_var


# ----------------------------------------------------------------------------
# Helpers for the self-test
# ----------------------------------------------------------------------------
def init_linear(key, out_dim, in_dim):
    """Mirror PyTorch nn.Linear default init: U[-1/sqrt(in), 1/sqrt(in)]."""
    kw, kb = jax.random.split(key)
    bound = 1.0 / jnp.sqrt(jnp.float32(in_dim))
    w = jax.random.uniform(kw, (out_dim, in_dim), jnp.float32, -bound, bound)
    b = jax.random.uniform(kb, (out_dim,), jnp.float32, -bound, bound)
    return (w, b)


def reference_forward(x, eps, params):
    """Pure-JAX reference with identical math (PyTorch-layout params)."""
    def lin(name, v):
        w, b = params[name]
        return v @ w.T + b

    h = jnp.maximum(lin("FC_input", x), 0.0)
    mean = lin("FC_mean", h)
    log_var = lin("FC_var", h)
    z = mean + jnp.exp(0.5 * log_var) * eps
    hd = jnp.maximum(lin("FC_hidden", z), 0.0)
    x_hat = jax.nn.sigmoid(lin("FC_output", hd))
    return x_hat, mean, log_var


if __name__ == "__main__":
    # Small synthetic shapes consistent with the module (MNIST would use
    # input_dim = 784; hidden/latent dims come from the module globals).
    batch = 100
    input_dim = 64
    hidden_dim = 400
    latent_dim = 20
    output_dim = input_dim

    root = jax.random.PRNGKey(0)
    kx, keps, k1, k2, k3, k4, k5 = jax.random.split(root, 7)

    torch_params = {
        "FC_input": init_linear(k1, hidden_dim, input_dim),
        "FC_mean": init_linear(k2, latent_dim, hidden_dim),
        "FC_var": init_linear(k3, latent_dim, hidden_dim),
        "FC_hidden": init_linear(k4, hidden_dim, latent_dim),
        "FC_output": init_linear(k5, output_dim, hidden_dim),
    }

    x = jax.random.normal(kx, (batch, input_dim), jnp.float32)
    # torch.rand_like -> uniform [0, 1); RNG is generated outside the kernel.
    eps = jax.random.uniform(keps, (batch, latent_dim), jnp.float32)

    r_xhat, r_mean, r_lv = reference_forward(x, eps, torch_params)

    # --- Strict correctness path: f32 weights, exact sigmoid ---
    p32 = prepare_params(torch_params, dtype=jnp.float32)
    x_hat, mean, log_var = vae_forward(x, eps, p32)
    jax.block_until_ready((x_hat, mean, log_var))
    assert jnp.allclose(mean, r_mean, atol=1e-3, rtol=1e-3)
    assert jnp.allclose(log_var, r_lv, atol=1e-3, rtol=1e-3)
    assert jnp.allclose(x_hat, r_xhat, atol=1e-3, rtol=1e-3)

    # --- Fast path (default): bf16 weights/matmul inputs, f32 accumulation ---
    pbf = prepare_params(torch_params)            # dtype=jnp.bfloat16
    x_hat_b, mean_b, log_var_b = vae_forward(x, eps, pbf)
    jax.block_until_ready((x_hat_b, mean_b, log_var_b))
    assert jnp.allclose(mean_b, r_mean, atol=5e-2, rtol=5e-2)
    assert jnp.allclose(log_var_b, r_lv, atol=5e-2, rtol=5e-2)
    assert jnp.allclose(x_hat_b, r_xhat, atol=5e-2, rtol=5e-2)

    print("KERNEL_OK")
</pallas_src>

<mosaic_0001>
module attributes {stable_mosaic.version = 11 : i64} {
  func.func @_vae_kernel(%arg0: i32, %arg1: memref<104x64xf32, #tpu.memory_space<vmem>>, %arg2: memref<104x128xf32, #tpu.memory_space<vmem>>, %arg3: memref<64x512xf32, #tpu.memory_space<vmem>>, %arg4: memref<1x512xf32, #tpu.memory_space<vmem>>, %arg5: memref<512x256xf32, #tpu.memory_space<vmem>>, %arg6: memref<1x256xf32, #tpu.memory_space<vmem>>, %arg7: memref<128x512xf32, #tpu.memory_space<vmem>>, %arg8: memref<1x512xf32, #tpu.memory_space<vmem>>, %arg9: memref<512x64xf32, #tpu.memory_space<vmem>>, %arg10: memref<1x64xf32, #tpu.memory_space<vmem>>, %arg11: memref<104x64xf32, #tpu.memory_space<vmem>>, %arg12: memref<104x256xf32, #tpu.memory_space<vmem>>) attributes {dimension_semantics = [#tpu.dimension_semantics<parallel>], iteration_bounds = array<i64: 1>, scalar_prefetch = 0 : i64, scratch_operands = 0 : i64, tpu.core_type = #tpu.core_type<tc>, window_params = [{transform_indices = @transform_0, window_bounds = array<i64: 104, 64>}, {transform_indices = @transform_1, window_bounds = array<i64: 104, 128>}, {pipeline_mode = #tpu.pipeline_mode<synchronous>, transform_indices = @transform_2, window_bounds = array<i64: 64, 512>}, {pipeline_mode = #tpu.pipeline_mode<synchronous>, transform_indices = @transform_3, window_bounds = array<i64: 1, 512>}, {pipeline_mode = #tpu.pipeline_mode<synchronous>, transform_indices = @transform_4, window_bounds = array<i64: 512, 256>}, {pipeline_mode = #tpu.pipeline_mode<synchronous>, transform_indices = @transform_5, window_bounds = array<i64: 1, 256>}, {pipeline_mode = #tpu.pipeline_mode<synchronous>, transform_indices = @transform_6, window_bounds = array<i64: 128, 512>}, {pipeline_mode = #tpu.pipeline_mode<synchronous>, transform_indices = @transform_7, window_bounds = array<i64: 1, 512>}, {pipeline_mode = #tpu.pipeline_mode<synchronous>, transform_indices = @transform_8, window_bounds = array<i64: 512, 64>}, {pipeline_mode = #tpu.pipeline_mode<synchronous>, transform_indices = @transform_9, window_bounds = array<i64: 1, 64>}, {transform_indices = @transform_10, window_bounds = array<i64: 104, 64>}, {transform_indices = @transform_11, window_bounds = array<i64: 104, 256>}]} {
    %c0 = arith.constant 0 : index
    %c0_0 = arith.constant 0 : index
    %0 = vector.load %arg1[%c0, %c0_0] : memref<104x64xf32, #tpu.memory_space<vmem>>, vector<104x64xf32>
    %c0_1 = arith.constant 0 : index
    %c0_2 = arith.constant 0 : index
    %1 = vector.load %arg3[%c0_1, %c0_2] : memref<64x512xf32, #tpu.memory_space<vmem>>, vector<64x512xf32>
    %cst = arith.constant dense<0.000000e+00> : vector<104x512xf32>
    %2 = tpu.matmul %0, %1, %cst {dimension_numbers = #tpu.dot_dimension_numbers<[1], [0], [0], [1], [0, 0, 1, 1], [], []>} : vector<104x64xf32>, vector<64x512xf32>, vector<104x512xf32> -> vector<104x512xf32>
    %c0_3 = arith.constant 0 : index
    %c0_4 = arith.constant 0 : index
    %3 = vector.load %arg4[%c0_3, %c0_4] : memref<1x512xf32, #tpu.memory_space<vmem>>, vector<1x512xf32>
    %4 = vector.broadcast %3 : vector<1x512xf32> to vector<104x512xf32>
    %5 = arith.addf %2, %4 : vector<104x512xf32>
    %cst_5 = arith.constant 0.000000e+00 : f32
    %6 = vector.broadcast %cst_5 : f32 to vector<104x512xf32>
    %7 = arith.maximumf %5, %6 : vector<104x512xf32>
    %c0_6 = arith.constant 0 : index
    %c0_7 = arith.constant 0 : index
    %8 = vector.load %arg5[%c0_6, %c0_7] : memref<512x256xf32, #tpu.memory_space<vmem>>, vector<512x256xf32>
    %cst_8 = arith.constant dense<0.000000e+00> : vector<104x256xf32>
    %9 = tpu.matmul %7, %8, %cst_8 {dimension_numbers = #tpu.dot_dimension_numbers<[1], [0], [0], [1], [0, 0, 1, 1], [], []>} : vector<104x512xf32>, vector<512x256xf32>, vector<104x256xf32> -> vector<104x256xf32>
    %c0_9 = arith.constant 0 : index
    %c0_10 = arith.constant 0 : index
    %10 = vector.load %arg6[%c0_9, %c0_10] : memref<1x256xf32, #tpu.memory_space<vmem>>, vector<1x256xf32>
    %11 = vector.broadcast %10 : vector<1x256xf32> to vector<104x256xf32>
    %12 = arith.addf %9, %11 : vector<104x256xf32>
    %13 = vector.extract_strided_slice %12 {offsets = [0, 0], sizes = [104, 128], strides = [1, 1]} : vector<104x256xf32> to vector<104x128xf32>
    %14 = vector.extract_strided_slice %12 {offsets = [0, 128], sizes = [104, 128], strides = [1, 1]} : vector<104x256xf32> to vector<104x128xf32>
    %cst_11 = arith.constant 5.000000e-01 : f32
    %15 = vector.broadcast %cst_11 : f32 to vector<104x128xf32>
    %16 = arith.mulf %15, %14 : vector<104x128xf32>
    %17 = math.exp %16 : vector<104x128xf32>
    %c0_12 = arith.constant 0 : index
    %c0_13 = arith.constant 0 : index
    %18 = vector.load %arg2[%c0_12, %c0_13] : memref<104x128xf32, #tpu.memory_space<vmem>>, vector<104x128xf32>
    %19 = arith.mulf %17, %18 : vector<104x128xf32>
    %20 = arith.addf %13, %19 : vector<104x128xf32>
    %c0_14 = arith.constant 0 : index
    %c0_15 = arith.constant 0 : index
    %21 = vector.load %arg7[%c0_14, %c0_15] : memref<128x512xf32, #tpu.memory_space<vmem>>, vector<128x512xf32>
    %cst_16 = arith.constant dense<0.000000e+00> : vector<104x512xf32>
    %22 = tpu.matmul %20, %21, %cst_16 {dimension_numbers = #tpu.dot_dimension_numbers<[1], [0], [0], [1], [0, 0, 1, 1], [], []>} : vector<104x128xf32>, vector<128x512xf32>, vector<104x512xf32> -> vector<104x512xf32>
    %c0_17 = arith.constant 0 : index
    %c0_18 = arith.constant 0 : index
    %23 = vector.load %arg8[%c0_17, %c0_18] : memref<1x512xf32, #tpu.memory_space<vmem>>, vector<1x512xf32>
    %24 = vector.broadcast %23 : vector<1x512xf32> to vector<104x512xf32>
    %25 = arith.addf %22, %24 : vector<104x512xf32>
    %cst_19 = arith.constant 0.000000e+00 : f32
    %26 = vector.broadcast %cst_19 : f32 to vector<104x512xf32>
    %27 = arith.maximumf %25, %26 : vector<104x512xf32>
    %c0_20 = arith.constant 0 : index
    %c0_21 = arith.constant 0 : index
    %28 = vector.load %arg9[%c0_20, %c0_21] : memref<512x64xf32, #tpu.memory_space<vmem>>, vector<512x64xf32>
    %cst_22 = arith.constant dense<0.000000e+00> : vector<104x64xf32>
    %29 = tpu.matmul %27, %28, %cst_22 {dimension_numbers = #tpu.dot_dimension_numbers<[1], [0], [0], [1], [0, 0, 1, 1], [], []>} : vector<104x512xf32>, vector<512x64xf32>, vector<104x64xf32> -> vector<104x64xf32>
    %c0_23 = arith.constant 0 : index
    %c0_24 = arith.constant 0 : index
    %30 = vector.load %arg10[%c0_23, %c0_24] : memref<1x64xf32, #tpu.memory_space<vmem>>, vector<1x64xf32>
    %31 = vector.broadcast %30 : vector<1x64xf32> to vector<104x64xf32>
    %32 = arith.addf %29, %31 : vector<104x64xf32>
    %cst_25 = arith.constant 0.000000e+00 : f32
    %33 = vector.broadcast %cst_25 : f32 to vector<104x64xf32>
    %34 = arith.subf %33, %32 : vector<104x64xf32>
    %35 = math.exp %34 : vector<104x64xf32>
    %cst_26 = arith.constant 1.000000e+00 : f32
    %36 = vector.broadcast %cst_26 : f32 to vector<104x64xf32>
    %37 = arith.addf %36, %35 : vector<104x64xf32>
    %cst_27 = arith.constant 1.000000e+00 : f32
    %38 = vector.broadcast %cst_27 : f32 to vector<104x64xf32>
    %39 = arith.divf %38, %37 : vector<104x64xf32>
    %c0_28 = arith.constant 0 : index
    %c0_29 = arith.constant 0 : index
    %40 = vector.load %arg11[%c0_28, %c0_29] : memref<104x64xf32, #tpu.memory_space<vmem>>, vector<104x64xf32>
    tpu.vector_store %arg11[%c0_28, %c0_29], %39 {strides = array<i32>} : memref<104x64xf32, #tpu.memory_space<vmem>>, vector<104x64xf32>,
    %c0_30 = arith.constant 0 : index
    %c0_31 = arith.constant 0 : index
    %41 = vector.load %arg12[%c0_30, %c0_31] : memref<104x256xf32, #tpu.memory_space<vmem>>, vector<104x256xf32>
    tpu.vector_store %arg12[%c0_30, %c0_31], %12 {strides = array<i32>} : memref<104x256xf32, #tpu.memory_space<vmem>>, vector<104x256xf32>,
    return
  }
  func.func @transform_0(%arg0: i32) -> (i32, i32) {
    %c0_i32 = arith.constant 0 : i32
    %c0_i32_0 = arith.constant 0 : i32
    return %arg0, %c0_i32 : i32, i32
  }
  func.func @transform_1(%arg0: i32) -> (i32, i32) {
    %c0_i32 = arith.constant 0 : i32
    %c0_i32_0 = arith.constant 0 : i32
    return %arg0, %c0_i32 : i32, i32
  }
  func.func @transform_2(%arg0: i32) -> (i32, i32) {
    %c0_i32 = arith.constant 0 : i32
    %c0_i32_0 = arith.constant 0 : i32
    %c0_i32_1 = arith.constant 0 : i32
    return %c0_i32, %c0_i32_0 : i32, i32
  }
  func.func @transform_3(%arg0: i32) -> (i32, i32) {
    %c0_i32 = arith.constant 0 : i32
    %c0_i32_0 = arith.constant 0 : i32
    %c0_i32_1 = arith.constant 0 : i32
    return %c0_i32, %c0_i32_0 : i32, i32
  }
  func.func @transform_4(%arg0: i32) -> (i32, i32) {
    %c0_i32 = arith.constant 0 : i32
    %c0_i32_0 = arith.constant 0 : i32
    %c0_i32_1 = arith.constant 0 : i32
    return %c0_i32, %c0_i32_0 : i32, i32
  }
  func.func @transform_5(%arg0: i32) -> (i32, i32) {
    %c0_i32 = arith.constant 0 : i32
    %c0_i32_0 = arith.constant 0 : i32
    %c0_i32_1 = arith.constant 0 : i32
    return %c0_i32, %c0_i32_0 : i32, i32
  }
  func.func @transform_6(%arg0: i32) -> (i32, i32) {
    %c0_i32 = arith.constant 0 : i32
    %c0_i32_0 = arith.constant 0 : i32
    %c0_i32_1 = arith.constant 0 : i32
    return %c0_i32, %c0_i32_0 : i32, i32
  }
  func.func @transform_7(%arg0: i32) -> (i32, i32) {
    %c0_i32 = arith.constant 0 : i32
    %c0_i32_0 = arith.constant 0 : i32
    %c0_i32_1 = arith.constant 0 : i32
    return %c0_i32, %c0_i32_0 : i32, i32
  }
  func.func @transform_8(%arg0: i32) -> (i32, i32) {
    %c0_i32 = arith.constant 0 : i32
    %c0_i32_0 = arith.constant 0 : i32
    %c0_i32_1 = arith.constant 0 : i32
    return %c0_i32, %c0_i32_0 : i32, i32
  }
  func.func @transform_9(%arg0: i32) -> (i32, i32) {
    %c0_i32 = arith.constant 0 : i32
    %c0_i32_0 = arith.constant 0 : i32
    %c0_i32_1 = arith.constant 0 : i32
    return %c0_i32, %c0_i32_0 : i32, i32
  }
  func.func @transform_10(%arg0: i32) -> (i32, i32) {
    %c0_i32 = arith.constant 0 : i32
    %c0_i32_0 = arith.constant 0 : i32
    return %arg0, %c0_i32 : i32, i32
  }
  func.func @transform_11(%arg0: i32) -> (i32, i32) {
    %c0_i32 = arith.constant 0 : i32
    %c0_i32_0 = arith.constant 0 : i32
    return %arg0, %c0_i32 : i32, i32
  }
}

</mosaic_0001>

<bundles_post_ra>
// kernel: vae_forward.1
= control target key start
LH: loop header
LB: loop body
LE: loop exit
PB: predicated region body
PF: predicated region fallthrough
CT: control target
= control target key end

     0   :  { %17 = vsyncpa [#allocation3], 0  ;;  %s2512_s17 = smov [#allocation2]   ;;  %s4013_s0 = inlined_call_operand.vmem [shape: f32[104,64], index: 0, kind: input, shape index: {}]   ;;  %s4014_s1 = inlined_call_operand.vmem [shape: f32[104,128], index: 1, kind: input, shape index: {}]   ;;  %s4015_s2 = inlined_call_operand.vmem [shape: f32[64,512], index: 2, kind: input, shape index: {}]   ;;  %s4016_s3 = inlined_call_operand.vmem [shape: f32[1,512], index: 3, kind: input, shape index: {}]   ;;  %s4017_s4 = inlined_call_operand.vmem [shape: f32[512,256], index: 4, kind: input, shape index: {}]   ;;  %s4018_s5 = inlined_call_operand.vmem [shape: f32[1,256], index: 5, kind: input, shape index: {}]   ;;  %s4019_s6 = inlined_call_operand.hbm [shape: f32[128,512], index: 6, kind: input, shape index: {}]   ;;  %s4020_s7 = inlined_call_operand.vmem [shape: f32[1,512], index: 7, kind: input, shape index: {}]   ;;  %s4021_s8 = inlined_call_operand.vmem [shape: f32[512,64], index: 8, kind: input, shape index: {}]   ;;  %s4022_s9 = inlined_call_operand.vmem [shape: f32[1,64], index: 9, kind: input, shape index: {}]   ;;  %s4023_s10 = inlined_call_operand.vmem [shape: f32[104,64], index: 10, kind: output, shape index: {0}]   ;;  %s4024_s11 = inlined_call_operand.vmem [shape: f32[104,256], index: 11, kind: output, shape index: {1}]  }
   0x1   :  { %s35_s18 = sshll.u32 %s2512_s17, 4  ;;  %s2488_s21 = scalar_lea.hbm %s4019_s6, 8192  ;;  %s36_s18 = int_to_ptr.vmem [resolvable:$true] %s35_s18 }
   0x2   :  { %p2489_p0 = scmp.ne.s32.totalorder %s4019_s6, %s2488_s21  ;;  %p2492_p1 = scmp.lt.u32.totalorder %s2488_s21, %s4019_s6 }
   0x4   :  { %p2494_p2 = pnand %p2492_p1, %p2489_p0 }
   0x6   :  { %2497 = shalt.err (!%p2494_p2)
}
   0x7   :  { %s2498_s26 = scalar_lea.vmem %s36_s18, 8192  ;;  %p2503_p4 = scmp.lt.s32.totalorder %s36_s18, %s36_s18 }
   0x8   :  { %p2499_p3 = scmp.ne.s32.totalorder %s36_s18, %s2498_s26  ;;  %p2504_p5 = scmp.lt.s32.totalorder %s2498_s26, %s2498_s26 }
   0xa   :  { %p2505_p6 = por %p2504_p5, %p2503_p4 }
   0xc   :  { %p2506_p7 = pnand %p2505_p6, %p2499_p3 }
   0xe   :  { %2509 = shalt.err (!%p2506_p7)
}
   0xf   :  { %s2513_s27 = smov 512   ;;  %s2514_s28 = smov 32  }
  0x10   :  { %41 = dma.hbm_to_vmem [thread:$0]  %s4019_s6, 8192, %s36_s18, [#allocation3], %s2513_s27, %s2513_s27, %s2514_s28  }
  0x11   :  { %2510 = dma.done.wait [#allocation3], 8192  }
  0x12   :  { %2511 = vsyncadd [#allocation3], 4294959104  ;;  %v2515_v0 = vmov 0.0   ;;  %v65_v1 = vld [vmem:[%s4015_s2 + $0x8] sm:$0xff]  ;;  %v64_v3 = vld [vmem:[%s4015_s2] sm:$0xff]  ;;  %vm118_vm0 = vcmask 523264  }
  0x13   :  { %222 = vmatprep.mubr.f32.mxu0 %v2515_v0  ;;  %365 = vmatprep.mubr.f32.mxu1 %v2515_v0  ;;  %v69_v2 = vld [vmem:[%s4015_s2 + $0x28] sm:$0xff]  ;;  %v68_v5 = vld [vmem:[%s4015_s2 + $0x20] sm:$0xff]  ;;  %v67_v23 = vld [vmem:[%s4015_s2 + $0x18] sm:$0xff] }
  0x14   :  { %v2050_v4 = vpack.c.bf16 %v69_v2, %v65_v1  ;;  %v73_v6 = vld [vmem:[%s4015_s2 + $0x48] sm:$0xff]  ;;  %v2052_v8 = vpack.c.bf16 %v68_v5, %v64_v3  ;;  %v72_v10 = vld [vmem:[%s4015_s2 + $0x40] sm:$0xff]  ;;  %v71_v25 = vld [vmem:[%s4015_s2 + $0x38] sm:$0xff] }
  0x15   :  { %v77_v7 = vld [vmem:[%s4015_s2 + $0x68] sm:$0xff]  ;;  %v76_v11 = vld [vmem:[%s4015_s2 + $0x60] sm:$0xff]  ;;  %v66_v26 = vld [vmem:[%s4015_s2 + $0x10] sm:$0xff]  ;;  %v2066_v28 = vpack.c.bf16 %v71_v25, %v67_v23 }
  0x16   :  { %v2054_v9 = vpack.c.bf16 %v77_v7, %v73_v6  ;;  %v81_v12 = vld [vmem:[%s4015_s2 + $0x88] sm:$0xff]  ;;  %2051 = vmatprep.subr.bf16.mxu0 %v2050_v4  ;;  %v2056_v14 = vpack.c.bf16 %v76_v11, %v72_v10  ;;  %v80_v16 = vld [vmem:[%s4015_s2 + $0x80] sm:$0xff]  ;;  %v70_v27 = vld [vmem:[%s4015_s2 + $0x30] sm:$0xff] }
  0x17   :  { %v85_v13 = vld [vmem:[%s4015_s2 + $0xa8] sm:$0xff]  ;;  %2053 = vmatpush1.bf16.msra.mxu0 %v2052_v8  ;;  %v84_v17 = vld [vmem:[%s4015_s2 + $0xa0] sm:$0xff]  ;;  %v2068_v29 = vpack.c.bf16 %v70_v27, %v66_v26  ;;  %v75_v30 = vld [vmem:[%s4015_s2 + $0x58] sm:$0xff]  ;;  %2067 = vmatprep.subr.bf16.mxu1 %v2066_v28 }
  0x18   :  { %2055 = vmatprep.subr.bf16.mxu0 %v2054_v9  ;;  %v2058_v15 = vpack.c.bf16 %v85_v13, %v81_v12  ;;  %v89_v18 = vld [vmem:[%s4015_s2 + $0xc8] sm:$0xff]  ;;  %v2060_v20 = vpack.c.bf16 %v84_v17, %v80_v16  ;;  %v88_v21 = vld [vmem:[%s4015_s2 + $0xc0] sm:$0xff]  ;;  %v79_v31 = vld [vmem:[%s4015_s2 + $0x78] sm:$0xff] }
  0x19   :  { %v93_v19 = vld [vmem:[%s4015_s2 + $0xe8] sm:$0xff]  ;;  %v92_v22 = vld [vmem:[%s4015_s2 + $0xe0] sm:$0xff]  ;;  %v2070_v32 = vpack.c.bf16 %v79_v31, %v75_v30  ;;  %v74_v33 = vld [vmem:[%s4015_s2 + $0x50] sm:$0xff]  ;;  %2069 = vmatpush1.bf16.msra.mxu1 %v2068_v29 }
  0x1a   :  { %v2062_v24 = vpack.c.bf16 %v93_v19, %v89_v18  ;;  %v78_v34 = vld [vmem:[%s4015_s2 + $0x70] sm:$0xff]  ;;  %v2064_v35 = vpack.c.bf16 %v92_v22, %v88_v21  ;;  %v83_v36 = vld [vmem:[%s4015_s2 + $0x98] sm:$0xff]  ;;  %v51_v40 = vld [vmem:[%s4013_s0] sm:$0xff] }
  0x1b   :  { %2057 = vmatpush1.bf16.msra.mxu0 %v2056_v14  ;;  %v87_v37 = vld [vmem:[%s4015_s2 + $0xb8] sm:$0xff]  ;;  %v2072_v38 = vpack.c.bf16 %v78_v34, %v74_v33  ;;  %v82_v39 = vld [vmem:[%s4015_s2 + $0x90] sm:$0xff]  ;;  %2071 = vmatprep.subr.bf16.mxu1 %v2070_v32  ;;  %v497_v45 = vld [vmem:[%s4017_s4 + $0x8] sm:$0xff] }
  0x1c   :  { %2059 = vmatprep.subr.bf16.mxu0 %v2058_v15  ;;  %v2074_v41 = vpack.c.bf16 %v87_v37, %v83_v36  ;;  %v86_v42 = vld [vmem:[%s4015_s2 + $0xb0] sm:$0xff]  ;;  %v91_v43 = vld [vmem:[%s4015_s2 + $0xd8] sm:$0xff]  ;;  %v496_v47 = vld [vmem:[%s4017_s4] sm:$0xff] }
  0x1d   :  { %v95_v44 = vld [vmem:[%s4015_s2 + $0xf8] sm:$0xff]  ;;  %v498_v49 = vld [vmem:[%s4017_s4 + $0x10] sm:$0xff]  ;;  %v501_v50 = vld [vmem:[%s4017_s4 + $0x28] sm:$0xff]  ;;  %2073 = vmatpush1.bf16.msra.mxu1 %v2072_v38  ;;  %v2076_v52 = vpack.c.bf16 %v86_v42, %v82_v39 }
  0x1e   :  { %v499_v46 = vld [vmem:[%s4017_s4 + $0x18] sm:$0xff]  ;;  %v90_v53 = vld [vmem:[%s4015_s2 + $0xd0] sm:$0xff]  ;;  %v2084_v54 = vpack.c.bf16 %v498_v49, %v496_v47  ;;  %v500_v56 = vld [vmem:[%s4017_s4 + $0x20] sm:$0xff]  ;;  %2075 = vmatprep.subr.bf16.mxu1 %v2074_v41  ;;  %v2078_v58 = vpack.c.bf16 %v95_v44, %v91_v43 }
  0x1f   :  { %2061 = vmatpush1.bf16.msra.mxu0 %v2060_v20  ;;  %v2082_v48 = vpack.c.bf16 %v499_v46, %v497_v45  ;;  %v503_v51 = vld [vmem:[%s4017_s4 + $0x38] sm:$0xff]  ;;  %v502_v57 = vld [vmem:[%s4017_s4 + $0x30] sm:$0xff]  ;;  %v505_v60 = vld [vmem:[%s4017_s4 + $0x48] sm:$0xff] }
  0x20   :  { %2063 = vmatprep.subr.bf16.mxu0 %v2062_v24  ;;  %v2086_v55 = vpack.c.bf16 %v503_v51, %v501_v50  ;;  %v94_v59 = vld [vmem:[%s4015_s2 + $0xf0] sm:$0xff]  ;;  %v507_v61 = vld [vmem:[%s4017_s4 + $0x58] sm:$0xff]  ;;  %v52_v62 = vld [vmem:[%s4013_s0 + $0x8] sm:$0xff]  ;;  %v2088_v63 = vpack.c.bf16 %v502_v57, %v500_v56 }
  0x21   :  { %2077 = vmatpush1.bf16.msra.mxu1 %v2076_v52  ;;  %v2080_v1 = vpack.c.bf16 %v94_v59, %v90_v53  ;;  %v2090_v2 = vpack.c.bf16 %v507_v61, %v505_v60  ;;  %v504_v3 = vld [vmem:[%s4017_s4 + $0x40] sm:$0xff]  ;;  %v506_v4 = vld [vmem:[%s4017_s4 + $0x50] sm:$0xff]  ;;  %v509_v5 = vld [vmem:[%s4017_s4 + $0x68] sm:$0xff] }
  0x22   :  { %2079 = vmatprep.subr.bf16.mxu1 %v2078_v58  ;;  %v511_v6 = vld [vmem:[%s4017_s4 + $0x78] sm:$0xff]  ;;  %v53_v7 = vld [vmem:[%s4013_s0 + $0x10] sm:$0xff]  ;;  %v2092_v8 = vpack.c.bf16 %v506_v4, %v504_v3  ;;  %v508_v10 = vld [vmem:[%s4017_s4 + $0x60] sm:$0xff] }
  0x23   :  { %2065 = vmatpush1.bf16.msra.mxu0 %v2064_v35  ;;  %v2094_v9 = vpack.c.bf16 %v511_v6, %v509_v5  ;;  %v510_v11 = vld [vmem:[%s4017_s4 + $0x70] sm:$0xff]  ;;  %v513_v12 = vld [vmem:[%s4017_s4 + $0x88] sm:$0xff]  ;;  %v515_v13 = vld [vmem:[%s4017_s4 + $0x98] sm:$0xff] }
  0x24   :  { %2083 = vmatprep.subr.bf16.mxu0 %v2082_v48  ;;  %v54_v14 = vld [vmem:[%s4013_s0 + $0x18] sm:$0xff]  ;;  %v2096_v15 = vpack.c.bf16 %v510_v11, %v508_v10  ;;  %v2098_v16 = vpack.c.bf16 %v515_v13, %v513_v12  ;;  %v512_v17 = vld [vmem:[%s4017_s4 + $0x80] sm:$0xff]  ;;  %v514_v18 = vld [vmem:[%s4017_s4 + $0x90] sm:$0xff] }
  0x25   :  { %2081 = vmatpush1.bf16.msra.mxu1 %v2080_v1  ;;  %v517_v19 = vld [vmem:[%s4017_s4 + $0xa8] sm:$0xff]  ;;  %v519_v20 = vld [vmem:[%s4017_s4 + $0xb8] sm:$0xff]  ;;  %v55_v21 = vld [vmem:[%s4013_s0 + $0x20] sm:$0xff]  ;;  %v2100_v22 = vpack.c.bf16 %v514_v18, %v512_v17 }
  0x26   :  { %1881 = vmatmul.mubr.msk.f32.vlgmr.msra.gmra.mrb[0].mxu0 %vm118_vm0, %v51_v40  ;;  %v2102_v23 = vpack.c.bf16 %v519_v20, %v517_v19  ;;  %v516_v24 = vld [vmem:[%s4017_s4 + $0xa0] sm:$0xff]  ;;  %v518_v25 = vld [vmem:[%s4017_s4 + $0xb0] sm:$0xff]  ;;  %v521_v26 = vld [vmem:[%s4017_s4 + $0xc8] sm:$0xff] }
  0x27   :  { %228 = vmatprep.mubr.f32.mxu0 %v2515_v0  ;;  %2085 = vmatpush1.bf16.msra.mxu0 %v2084_v54  ;;  %v523_v27 = vld [vmem:[%s4017_s4 + $0xd8] sm:$0xff]  ;;  %v56_v28 = vld [vmem:[%s4013_s0 + $0x28] sm:$0xff]  ;;  %v2104_v29 = vpack.c.bf16 %v518_v25, %v516_v24  ;;  %v520_v31 = vld [vmem:[%s4017_s4 + $0xc0] sm:$0xff] }
  0x28   :  { %2087 = vmatprep.subr.bf16.mxu0 %v2086_v55  ;;  %1894 = vmatmul.mubr.msk.f32.vlgmr.msra.gmra.mrb[0].mxu1 %vm118_vm0, %v51_v40  ;;  %v2106_v30 = vpack.c.bf16 %v523_v27, %v521_v26  ;;  %v522_v32 = vld [vmem:[%s4017_s4 + $0xd0] sm:$0xff]  ;;  %v525_v33 = vld [vmem:[%s4017_s4 + $0xe8] sm:$0xff]  ;;  %v527_v34 = vld [vmem:[%s4017_s4 + $0xf8] sm:$0xff] }
  0x29   :  { %371 = vmatprep.mubr.f32.mxu1 %v2515_v0  ;;  %v57_v35 = vld [vmem:[%s4013_s0 + $0x30] sm:$0xff]  ;;  %v2108_v36 = vpack.c.bf16 %v522_v32, %v520_v31  ;;  %v2110_v37 = vpack.c.bf16 %v527_v34, %v525_v33  ;;  %v524_v38 = vld [vmem:[%s4017_s4 + $0xe0] sm:$0xff]  ;;  %v529_v40 = vld [vmem:[%s4017_s4 + $0x108] sm:$0xff] }
  0x2a   :  { %1882 = vmatmul.mubr.msk.f32.gmra.mrb[2].mxu0 %vm118_vm0, %v52_v62  ;;  %v526_v39 = vld [vmem:[%s4017_s4 + $0xf0] sm:$0xff]  ;;  %v531_v41 = vld [vmem:[%s4017_s4 + $0x118] sm:$0xff]  ;;  %v528_v45 = vld [vmem:[%s4017_s4 + $0x100] sm:$0xff] }
  0x2b   :  { %234 = vmatprep.mubr.f32.mxu0 %v2515_v0  ;;  %2089 = vmatpush1.bf16.msra.mxu0 %v2088_v63  ;;  %v58_v42 = vld [vmem:[%s4013_s0 + $0x38] sm:$0xff]  ;;  %v2112_v43 = vpack.c.bf16 %v526_v39, %v524_v38  ;;  %v2114_v44 = vpack.c.bf16 %v531_v41, %v529_v40  ;;  %v530_v46 = vld [vmem:[%s4017_s4 + $0x110] sm:$0xff]  ;;  %v533_v47 = vld [vmem:[%s4017_s4 + $0x128] sm:$0xff] }
  0x2c   :  { %2091 = vmatprep.subr.bf16.mxu0 %v2090_v2  ;;  %1895 = vmatmul.mubr.msk.f32.gmra.mrb[2].mxu1 %vm118_vm0, %v52_v62  ;;  %v535_v48 = vld [vmem:[%s4017_s4 + $0x138] sm:$0xff]  ;;  %v59_v49 = vld [vmem:[%s4013_s0 + $0x40] sm:$0xff]  ;;  %v2116_v50 = vpack.c.bf16 %v530_v46, %v528_v45  ;;  %v534_v53 = vld [vmem:[%s4017_s4 + $0x130] sm:$0xff] }
  0x2d   :  { %377 = vmatprep.mubr.f32.mxu1 %v2515_v0  ;;  %v2118_v51 = vpack.c.bf16 %v535_v48, %v533_v47  ;;  %v532_v52 = vld [vmem:[%s4017_s4 + $0x120] sm:$0xff]  ;;  %v537_v54 = vld [vmem:[%s4017_s4 + $0x148] sm:$0xff]  ;;  %v539_v55 = vld [vmem:[%s4017_s4 + $0x158] sm:$0xff] }
  0x2e   :  { %1883 = vmatmul.mubr.msk.f32.gmra.mrb[4].mxu0 %vm118_vm0, %v53_v7  ;;  %v60_v56 = vld [vmem:[%s4013_s0 + $0x48] sm:$0xff]  ;;  %v2120_v57 = vpack.c.bf16 %v534_v53, %v532_v52  ;;  %v2122_v58 = vpack.c.bf16 %v539_v55, %v537_v54  ;;  %v536_v59 = vld [vmem:[%s4017_s4 + $0x140] sm:$0xff]  ;;  %v538_v60 = vld [vmem:[%s4017_s4 + $0x150] sm:$0xff] }
  0x2f   :  { %240 = vmatprep.mubr.f32.mxu0 %v2515_v0  ;;  %2093 = vmatpush1.bf16.msra.mxu0 %v2092_v8  ;;  %v541_v61 = vld [vmem:[%s4017_s4 + $0x168] sm:$0xff]  ;;  %v543_v62 = vld [vmem:[%s4017_s4 + $0x178] sm:$0xff]  ;;  %v61_v63 = vld [vmem:[%s4013_s0 + $0x50] sm:$0xff]  ;;  %v2124_v1 = vpack.c.bf16 %v538_v60, %v536_v59 }
  0x30   :  { %2095 = vmatprep.subr.bf16.mxu0 %v2094_v9  ;;  %1896 = vmatmul.mubr.msk.f32.gmra.mrb[4].mxu1 %vm118_vm0, %v53_v7  ;;  %v2126_v2 = vpack.c.bf16 %v543_v62, %v541_v61  ;;  %v540_v3 = vld [vmem:[%s4017_s4 + $0x160] sm:$0xff]  ;;  %v542_v4 = vld [vmem:[%s4017_s4 + $0x170] sm:$0xff]  ;;  %v545_v5 = vld [vmem:[%s4017_s4 + $0x188] sm:$0xff] }
  0x31   :  { %383 = vmatprep.mubr.f32.mxu1 %v2515_v0  ;;  %v547_v6 = vld [vmem:[%s4017_s4 + $0x198] sm:$0xff]  ;;  %v2128_v8 = vpack.c.bf16 %v542_v4, %v540_v3  ;;  %v544_v10 = vld [vmem:[%s4017_s4 + $0x180] sm:$0xff]  ;;  %v546_v11 = vld [vmem:[%s4017_s4 + $0x190] sm:$0xff] }
  0x32   :  { %1884 = vmatmul.mubr.msk.f32.gmra.mrb[6].mxu0 %vm118_vm0, %v54_v14  ;;  %v62_v7 = vld [vmem:[%s4013_s0 + $0x58] sm:$0xff]  ;;  %v2130_v9 = vpack.c.bf16 %v547_v6, %v545_v5  ;;  %v549_v12 = vld [vmem:[%s4017_s4 + $0x1a8] sm:$0xff]  ;;  %v548_v17 = vld [vmem:[%s4017_s4 + $0x1a0] sm:$0xff] }
  0x33   :  { %246 = vmatprep.mubr.f32.mxu0 %v2515_v0  ;;  %2097 = vmatpush1.bf16.msra.mxu0 %v2096_v15  ;;  %v551_v13 = vld [vmem:[%s4017_s4 + $0x1b8] sm:$0xff]  ;;  %v2132_v15 = vpack.c.bf16 %v546_v11, %v544_v10  ;;  %v550_v18 = vld [vmem:[%s4017_s4 + $0x1b0] sm:$0xff]  ;;  %v553_v19 = vld [vmem:[%s4017_s4 + $0x1c8] sm:$0xff] }
  0x34   :  { %2099 = vmatprep.subr.bf16.mxu0 %v2098_v16  ;;  %1897 = vmatmul.mubr.msk.f32.gmra.mrb[6].mxu1 %vm118_vm0, %v54_v14  ;;  %v63_v14 = vld [vmem:[%s4013_s0 + $0x60] sm:$0xff]  ;;  %v2134_v16 = vpack.c.bf16 %v551_v13, %v549_v12  ;;  %v555_v20 = vld [vmem:[%s4017_s4 + $0x1d8] sm:$0xff]  ;;  %v554_v24 = vld [vmem:[%s4017_s4 + $0x1d0] sm:$0xff] }
  0x35   :  { %389 = vmatprep.mubr.f32.mxu1 %v2515_v0  ;;  %v557_v26 = vld [vmem:[%s4017_s4 + $0x1e8] sm:$0xff]  ;;  %v559_v27 = vld [vmem:[%s4017_s4 + $0x1f8] sm:$0xff]  ;;  %v1000_v39 = vld [vmem:[#allocation2] sm:$0xff] }
  0x36   :  { %1885 = vmatmul.mubr.msk.f32.gmra.mrb[8].mxu0 %vm118_vm0, %v55_v21  ;;  %v561_v32 = vld [vmem:[%s4017_s4 + $0x208] sm:$0xff]  ;;  %v563_v33 = vld [vmem:[%s4017_s4 + $0x218] sm:$0xff]  ;;  %v1004_v41 = vld [vmem:[#allocation2 + $0x20] sm:$0xff] }
  0x37   :  { %252 = vmatprep.mubr.f32.mxu0 %v2515_v0  ;;  %2101 = vmatpush1.bf16.msra.mxu0 %v2100_v22  ;;  %v2138_v22 = vpack.c.bf16 %v555_v20, %v553_v19  ;;  %v2146_v34 = vpack.c.bf16 %v563_v33, %v561_v32  ;;  %v1005_v38 = vld [vmem:[#allocation2 + $0x28] sm:$0xff]  ;;  %v2212_v45 = vpack.c.bf16 %v1004_v41, %v1000_v39  ;;  %v1008_v47 = vld [vmem:[#allocation2 + $0x40] sm:$0xff]  ;;  %v562_v6 = vld [vmem:[%s4017_s4 + $0x210] sm:$0xff] }
  0x38   :  { %2103 = vmatprep.subr.bf16.mxu0 %v2102_v23  ;;  %1898 = vmatmul.mubr.msk.f32.gmra.mrb[8].mxu1 %vm118_vm0, %v55_v21  ;;  %v2136_v21 = vpack.c.bf16 %v550_v18, %v548_v17  ;;  %v552_v23 = vld [vmem:[%s4017_s4 + $0x1c0] sm:$0xff]  ;;  %v1021_v52 = vld [vmem:[#allocation2 + $0xa8] sm:$0xff]  ;;  %v567_v11 = vld [vmem:[%s4017_s4 + $0x238] sm:$0xff] }
  0x39   :  { %395 = vmatprep.mubr.f32.mxu1 %v2515_v0  ;;  %v2140_v25 = vpack.c.bf16 %v554_v24, %v552_v23  ;;  %v1012_v48 = vld [vmem:[#allocation2 + $0x60] sm:$0xff]  ;;  %v1029_v59 = vld [vmem:[#allocation2 + $0xe8] sm:$0xff] }
  0x3a   :  { %1886 = vmatmul.mubr.msk.f32.gmra.mrb[10].mxu0 %vm118_vm0, %v56_v28  ;;  %v2216_v53 = vpack.c.bf16 %v1012_v48, %v1008_v47  ;;  %v1016_v55 = vld [vmem:[#allocation2 + $0x80] sm:$0xff]  ;;  %v565_v10 = vld [vmem:[%s4017_s4 + $0x228] sm:$0xff] }
  0x3b   :  { %258 = vmatprep.mubr.f32.mxu0 %v2515_v0  ;;  %2105 = vmatpush1.bf16.msra.mxu0 %v2104_v29  ;;  %v556_v29 = vld [vmem:[%s4017_s4 + $0x1e0] sm:$0xff]  ;;  %v2150_v20 = vpack.c.bf16 %v567_v11, %v565_v10  ;;  %v573_v41 = vld [vmem:[%s4017_s4 + $0x268] sm:$0xff] }
  0x3c   :  { %2107 = vmatprep.subr.bf16.mxu0 %v2106_v30  ;;  %1899 = vmatmul.mubr.msk.f32.gmra.mrb[10].mxu1 %vm118_vm0, %v56_v28  ;;  %v2142_v28 = vpack.c.bf16 %v559_v27, %v557_v26  ;;  %v558_v30 = vld [vmem:[%s4017_s4 + $0x1f0] sm:$0xff]  ;;  %v1028_v3 = vld [vmem:[#allocation2 + $0xe0] sm:$0xff]  ;;  %v569_v26 = vld [vmem:[%s4017_s4 + $0x248] sm:$0xff] }
  0x3d   :  { %401 = vmatprep.mubr.f32.mxu1 %v2515_v0  ;;  %v2144_v31 = vpack.c.bf16 %v558_v30, %v556_v29  ;;  %v1032_v17 = vld [vmem:[#allocation2 + $0x100] sm:$0xff]  ;;  %v571_v27 = vld [vmem:[%s4017_s4 + $0x258] sm:$0xff]  ;;  %v581_v11 = vld [vmem:[%s4017_s4 + $0x2a8] sm:$0xff] }
  0x3e   :  { %1887 = vmatmul.mubr.msk.f32.gmra.mrb[12].mxu0 %vm118_vm0, %v57_v35  ;;  %v1036_v18 = vld [vmem:[#allocation2 + $0x120] sm:$0xff]  ;;  %v2154_v33 = vpack.c.bf16 %v571_v27, %v569_v26  ;;  %v587_v26 = vld [vmem:[%s4017_s4 + $0x2d8] sm:$0xff] }
  0x3f   :  { %264 = vmatprep.mubr.f32.mxu0 %v2515_v0  ;;  %2109 = vmatpush1.bf16.msra.mxu0 %v2108_v36  ;;  %v2228_v29 = vpack.c.bf16 %v1036_v18, %v1032_v17 }
  0x40   :  { %2111 = vmatprep.subr.bf16.mxu0 %v2110_v37  ;;  %1900 = vmatmul.mubr.msk.f32.gmra.mrb[12].mxu1 %vm118_vm0, %v57_v35  ;;  %v98_v35 = vlaneseq  ;;  %v1001_v37 = vld [vmem:[#allocation2 + $0x8] sm:$0xff] }
  0x41   :  { %407 = vmatprep.mubr.f32.mxu1 %v2515_v0  ;;  %v2210_v40 = vpack.c.bf16 %v1005_v38, %v1001_v37 }
  0x42   :  { %1888 = vmatmul.mubr.msk.f32.gmra.mrb[14].mxu0 %vm118_vm0, %v58_v42  ;;  %v2974_v36 = vshrl.u32 %v98_v35, 7  ;;  %v570_v35 = vld [vmem:[%s4017_s4 + $0x250] sm:$0xff] }
  0x43   :  { %270 = vmatprep.mubr.f32.mxu0 %v2515_v0  ;;  %2113 = vmatpush1.bf16.msra.mxu0 %v2112_v43  ;;  %v1013_v43 = vld [vmem:[#allocation2 + $0x68] sm:$0xff] }
  0x44   :  { %2115 = vmatprep.subr.bf16.mxu0 %v2114_v44  ;;  %1901 = vmatmul.mubr.msk.f32.gmra.mrb[14].mxu1 %vm118_vm0, %v58_v42  ;;  %v1009_v42 = vld [vmem:[#allocation2 + $0x48] sm:$0xff]  ;;  %v2977_v44 = vsub.s32 0, %v2974_v36 }
  0x45   :  { %413 = vmatprep.mubr.f32.mxu1 %v2515_v0  ;;  %v2214_v46 = vpack.c.bf16 %v1013_v43, %v1009_v42  ;;  %2211 = vmatprep.subr.bf16.mxu1 %v2210_v40  ;;  %v575_v42 = vld [vmem:[%s4017_s4 + $0x278] sm:$0xff] }
  0x46   :  { %1889 = vmatmul.mubr.msk.f32.gmra.mrb[16].mxu0 %vm118_vm0, %v59_v49  ;;  %2213 = vmatpush1.bf16.msra.mxu1 %v2212_v45 }
  0x47   :  { %276 = vmatprep.mubr.f32.mxu0 %v2515_v0  ;;  %2117 = vmatpush1.bf16.msra.mxu0 %v2116_v50  ;;  %v2982_v50 = vld [vmem:[%s4016_s3] sm:$0xf] }
  0x48   :  { %2119 = vmatprep.subr.bf16.mxu0 %v2118_v51  ;;  %1902 = vmatmul.mubr.msk.f32.gmra.mrb[16].mxu1 %vm118_vm0, %v59_v49  ;;  %v1017_v49 = vld [vmem:[#allocation2 + $0x88] sm:$0xff]  ;;  %v2985_v51 = vsub.s32 1, %v2974_v36 }
  0x49   :  { %419 = vmatprep.mubr.f32.mxu1 %v2515_v0  ;;  %2215 = vmatprep.subr.bf16.mxu1 %v2214_v46  ;;  %v2218_v54 = vpack.c.bf16 %v1021_v52, %v1017_v49  ;;  %v2158_v49 = vpack.c.bf16 %v575_v42, %v573_v41  ;;  %v572_v52 = vld [vmem:[%s4017_s4 + $0x260] sm:$0xff]  ;;  %v589_v41 = vld [vmem:[%s4017_s4 + $0x2e8] sm:$0xff]  ;;  %v591_v42 = vld [vmem:[%s4017_s4 + $0x2f8] sm:$0xff] }
  0x4a   :  { %1890 = vmatmul.mubr.msk.f32.gmra.mrb[18].mxu0 %vm118_vm0, %v60_v56  ;;  %v2993_v60 = vrot.slane %v2982_v50, %v2985_v51  ;;  %2217 = vmatpush1.bf16.msra.mxu1 %v2216_v53  ;;  %v574_v53 = vld [vmem:[%s4017_s4 + $0x270] sm:$0xff] }
  0x4b   :  { %282 = vmatprep.mubr.f32.mxu0 %v2515_v0  ;;  %2121 = vmatpush1.bf16.msra.mxu0 %v2120_v57  ;;  %v2989_v57 = vrot.slane %v2982_v50, %v2977_v44 }
  0x4c   :  { %2123 = vmatprep.subr.bf16.mxu0 %v2122_v58  ;;  %1903 = vmatmul.mubr.msk.f32.gmra.mrb[18].mxu1 %vm118_vm0, %v60_v56  ;;  %v1020_v56 = vld [vmem:[#allocation2 + $0xa0] sm:$0xff]  ;;  %v1025_v58 = vld [vmem:[#allocation2 + $0xc8] sm:$0xff] }
  0x4d   :  { %425 = vmatprep.mubr.f32.mxu1 %v2515_v0  ;;  %v2220_v61 = vpack.c.bf16 %v1020_v56, %v1016_v55  ;;  %2219 = vmatprep.subr.bf16.mxu1 %v2218_v54 }
  0x4e   :  { %1891 = vmatmul.mubr.msk.f32.gmra.mrb[20].mxu0 %vm118_vm0, %v61_v63 }
  0x4f   :  { %288 = vmatprep.mubr.f32.mxu0 %v2515_v0  ;;  %2125 = vmatpush1.bf16.msra.mxu0 %v2124_v1  ;;  %v2222_v1 = vpack.c.bf16 %v1029_v59, %v1025_v58  ;;  %v577_v59 = vld [vmem:[%s4017_s4 + $0x288] sm:$0xff] }
  0x50   :  { %2127 = vmatprep.subr.bf16.mxu0 %v2126_v2  ;;  %1904 = vmatmul.mubr.msk.f32.gmra.mrb[20].mxu1 %vm118_vm0, %v61_v63  ;;  %v560_v63 = vld [vmem:[%s4017_s4 + $0x200] sm:$0xff] }
  0x51   :  { %431 = vmatprep.mubr.f32.mxu1 %v2515_v0  ;;  %v1024_v2 = vld [vmem:[#allocation2 + $0xc0] sm:$0xff]  ;;  %2221 = vmatpush1.bf16.msra.mxu1 %v2220_v61  ;;  %v579_v61 = vld [vmem:[%s4017_s4 + $0x298] sm:$0xff] }
  0x52   :  { %1892 = vmatmul.mubr.msk.f32.gmra.mrb[22].mxu0 %vm118_vm0, %v62_v7  ;;  %v2224_v12 = vpack.c.bf16 %v1028_v3, %v1024_v2  ;;  %2223 = vmatprep.subr.bf16.mxu1 %v2222_v1  ;;  %v2160_v1 = vpack.c.bf16 %v574_v53, %v572_v52  ;;  %v2174_v52 = vpack.c.bf16 %v591_v42, %v589_v41  ;;  %v588_v53 = vld [vmem:[%s4017_s4 + $0x2e0] sm:$0xff]  ;;  %v112_v42 = vsub.s32 3, %v2974_v36 }
  0x53   :  { %294 = vmatprep.mubr.f32.mxu0 %v2515_v0  ;;  %2129 = vmatpush1.bf16.msra.mxu0 %v2128_v8  ;;  %v1037_v8 = vld [vmem:[#allocation2 + $0x128] sm:$0xff] }
  0x54   :  { %2131 = vmatprep.subr.bf16.mxu0 %v2130_v9  ;;  %1905 = vmatmul.mubr.msk.f32.gmra.mrb[22].mxu1 %vm118_vm0, %v62_v7  ;;  %v1033_v7 = vld [vmem:[#allocation2 + $0x108] sm:$0xff] }
  0x55   :  { %437 = vmatprep.mubr.f32.mxu1 %v2515_v0  ;;  %2225 = vmatpush1.bf16.msra.mxu1 %v2224_v12  ;;  %v583_v12 = vld [vmem:[%s4017_s4 + $0x2b8] sm:$0xff] }
  0x56   :  { %1893 = vmatmul.mubr.msk.f32.gmra.mrb[24].mxu0 %vm118_vm0, %v63_v14  ;;  %v2166_v18 = vpack.c.bf16 %v583_v12, %v581_v11 }
  0x57   :  { %2133 = vmatpush1.bf16.msra.mxu0 %v2132_v15 }
  0x58   :  { %2135 = vmatprep.subr.bf16.mxu0 %v2134_v16  ;;  %1906 = vmatmul.mubr.msk.f32.gmra.mrb[24].mxu1 %vm118_vm0, %v63_v14  ;;  %v2148_v14 = vpack.c.bf16 %v562_v6, %v560_v63  ;;  %v2226_v16 = vpack.c.bf16 %v1037_v8, %v1033_v7  ;;  %v578_v6 = vld [vmem:[%s4017_s4 + $0x290] sm:$0xff] }
  0x59   :  { %1150 = vmatprep.mubr.f32.mxu1 %v2515_v0 }
  0x5a   :  { %2227 = vmatprep.subr.bf16.mxu1 %v2226_v16 }
  0x5b   :  { %2137 = vmatpush1.bf16.msra.mxu0 %v2136_v21  ;;  %v564_v21 = vld [vmem:[%s4017_s4 + $0x220] sm:$0xff]  ;;  %2229 = vmatpush1.bf16.msra.mxu1 %v2228_v29 }
  0x5c   :  { %2139 = vmatprep.subr.bf16.mxu0 %v2138_v22  ;;  %v566_v22 = vld [vmem:[%s4017_s4 + $0x230] sm:$0xff] }
  0x5d   :  { %v2152_v30 = vpack.c.bf16 %v566_v22, %v564_v21 }
  0x5f   :  { %2141 = vmatpush1.bf16.msra.mxu0 %v2140_v25 }
  0x60   :  { %2143 = vmatprep.subr.bf16.mxu0 %v2142_v28 }
  0x63   :  { %2145 = vmatpush1.bf16.msra.mxu0 %v2144_v31 }
  0x64   :  { %2147 = vmatprep.subr.bf16.mxu0 %v2146_v34  ;;  %v568_v34 = vld [vmem:[%s4017_s4 + $0x240] sm:$0xff] }
  0x65   :  { %v2156_v46 = vpack.c.bf16 %v570_v35, %v568_v34  ;;  %v586_v34 = vld [vmem:[%s4017_s4 + $0x2d0] sm:$0xff] }
  0xf9   :  { %v224_v62 = vpop.f32.mrb[0].mxu0 }
  0xfa   :  { %v225_v4 = vadd.f32 %v224_v62, %v2989_v57  ;;  %v226_v5 = vpop.f32.mrb[1].mxu0 }
  0xfb   :  { %v227_v9 = vadd.f32 %v226_v5, %v2993_v60  ;;  %v3030_v39 = vpop.f32.mrb[0].mxu1  ;;  %v576_v5 = vld [vmem:[%s4017_s4 + $0x280] sm:$0xff] }
  0xfc   :  { %v444_v19 = vmax.f32 %v225_v4, 0.0  ;;  %v3039_v43 = vpop.f32.mrb[1].mxu1  ;;  %v2162_v4 = vpack.c.bf16 %v579_v61, %v577_v59 }
  0xfd   :  { %v445_v13 = vmax.f32 %v227_v9, 0.0  ;;  %v230_v15 = vpop.f32.mrb[2].mxu0 }
  0xfe   :  { %v231_v23 = vadd.f32 %v230_v15, %v2989_v57  ;;  %v232_v24 = vpop.f32.mrb[3].mxu0  ;;  %v2164_v15 = vpack.c.bf16 %v578_v6, %v576_v5 }
  0xff   :  { %700 = vmatprep.mubr.f32.mxu0 %v445_v13  ;;  %v233_v25 = vadd.f32 %v232_v24, %v2993_v60  ;;  %v3048_v56 = vpop.f32.mrb[2].mxu1 }
 0x100   :  { %701 = vmatmul.mubr.f32.vlgmr.msra.gmra.mrb[26].mxu0 %v444_v19  ;;  %v448_v28 = vmax.f32 %v231_v23, 0.0  ;;  %v3057_v62 = vpop.f32.mrb[3].mxu1  ;;  %v580_v19 = vld [vmem:[%s4017_s4 + $0x2a0] sm:$0xff] }
 0x101   :  { %2149 = vmatpush1.bf16.msra.mxu0 %v2148_v14  ;;  %v449_v31 = vmax.f32 %v233_v25, 0.0  ;;  %v236_v32 = vpop.f32.mrb[4].mxu0  ;;  %v585_v25 = vld [vmem:[%s4017_s4 + $0x2c8] sm:$0xff] }
 0x102   :  { %2151 = vmatprep.subr.bf16.mxu0 %v2150_v20  ;;  %v237_v37 = vadd.f32 %v236_v32, %v2989_v57  ;;  %v238_v38 = vpop.f32.mrb[5].mxu0  ;;  %v582_v20 = vld [vmem:[%s4017_s4 + $0x2b0] sm:$0xff]  ;;  %v2170_v32 = vpack.c.bf16 %v587_v26, %v585_v25  ;;  %v596_v25 = vld [vmem:[%s4017_s4 + $0x320] sm:$0xff] }
 0x103   :  { %v239_v40 = vadd.f32 %v238_v38, %v2993_v60  ;;  %706 = vmatprep.mubr.f32.mxu0 %v449_v31  ;;  %v3066_v9 = vpop.f32.mrb[4].mxu1  ;;  %v2168_v29 = vpack.c.bf16 %v582_v20, %v580_v19  ;;  %v598_v26 = vld [vmem:[%s4017_s4 + $0x330] sm:$0xff] }
 0x104   :  { %v452_v45 = vmax.f32 %v237_v37, 0.0  ;;  %707 = vmatmul.mubr.f32.gmra.mrb[28].mxu0 %v448_v28  ;;  %v3075_v13 = vpop.f32.mrb[5].mxu1 }
 0x105   :  { %2153 = vmatpush1.bf16.msra.mxu0 %v2152_v30  ;;  %v453_v47 = vmax.f32 %v239_v40, 0.0  ;;  %v242_v48 = vpop.f32.mrb[6].mxu0 }
 0x106   :  { %2155 = vmatprep.subr.bf16.mxu0 %v2154_v33  ;;  %v243_v54 = vadd.f32 %v242_v48, %v2989_v57  ;;  %v244_v55 = vpop.f32.mrb[7].mxu0  ;;  %v584_v33 = vld [vmem:[%s4017_s4 + $0x2c0] sm:$0xff] }
 0x107   :  { %v245_v58 = vadd.f32 %v244_v55, %v2993_v60  ;;  %712 = vmatprep.mubr.f32.mxu0 %v453_v47  ;;  %v3084_v23 = vpop.f32.mrb[6].mxu1  ;;  %v2172_v47 = vpack.c.bf16 %v586_v34, %v584_v33  ;;  %v603_v33 = vld [vmem:[%s4017_s4 + $0x358] sm:$0xff] }
 0x108   :  { %v456_v63 = vmax.f32 %v243_v54, 0.0  ;;  %713 = vmatmul.mubr.f32.gmra.mrb[30].mxu0 %v452_v45  ;;  %v3093_v27 = vpop.f32.mrb[7].mxu1  ;;  %v590_v54 = vld [vmem:[%s4017_s4 + $0x2f0] sm:$0xff] }
 0x109   :  { %2157 = vmatpush1.bf16.msra.mxu0 %v2156_v46  ;;  %v457_v2 = vmax.f32 %v245_v58, 0.0  ;;  %v248_v3 = vpop.f32.mrb[8].mxu0 }
 0x10a   :  { %2159 = vmatprep.subr.bf16.mxu0 %v2158_v49  ;;  %v249_v7 = vadd.f32 %v248_v3, %v2989_v57  ;;  %v250_v8 = vpop.f32.mrb[9].mxu0 }
 0x10b   :  { %v251_v10 = vadd.f32 %v250_v8, %v2993_v60  ;;  %718 = vmatprep.mubr.f32.mxu0 %v457_v2  ;;  %v3102_v38 = vpop.f32.mrb[8].mxu1  ;;  %v592_v8 = vld [vmem:[%s4017_s4 + $0x300] sm:$0xff] }
 0x10c   :  { %v460_v14 = vmax.f32 %v249_v7, 0.0  ;;  %719 = vmatmul.mubr.f32.gmra.mrb[32].mxu0 %v456_v63  ;;  %v3111_v45 = vpop.f32.mrb[9].mxu1  ;;  %v593_v63 = vld [vmem:[%s4017_s4 + $0x308] sm:$0xff] }
 0x10d   :  { %2161 = vmatpush1.bf16.msra.mxu0 %v2160_v1  ;;  %v461_v16 = vmax.f32 %v251_v10, 0.0  ;;  %v254_v17 = vpop.f32.mrb[10].mxu0  ;;  %v595_v1 = vld [vmem:[%s4017_s4 + $0x318] sm:$0xff]  ;;  %v594_v10 = vld [vmem:[%s4017_s4 + $0x310] sm:$0xff] }
 0x10e   :  { %2163 = vmatprep.subr.bf16.mxu0 %v2162_v4  ;;  %v255_v21 = vadd.f32 %v254_v17, %v2989_v57  ;;  %v256_v22 = vpop.f32.mrb[11].mxu0  ;;  %v2176_v4 = vpack.c.bf16 %v590_v54, %v588_v53  ;;  %v2178_v7 = vpack.c.bf16 %v595_v1, %v593_v63  ;;  %v599_v17 = vld [vmem:[%s4017_s4 + $0x338] sm:$0xff]  ;;  %v2180_v20 = vpack.c.bf16 %v594_v10, %v592_v8  ;;  %v606_v8 = vld [vmem:[%s4017_s4 + $0x370] sm:$0xff] }
 0x10f   :  { %v257_v24 = vadd.f32 %v256_v22, %v2993_v60  ;;  %724 = vmatprep.mubr.f32.mxu0 %v461_v16  ;;  %v3120_v59 = vpop.f32.mrb[10].mxu1  ;;  %v597_v16 = vld [vmem:[%s4017_s4 + $0x328] sm:$0xff] }
 0x110   :  { %v464_v28 = vmax.f32 %v255_v21, 0.0  ;;  %725 = vmatmul.mubr.f32.gmra.mrb[34].mxu0 %v460_v14  ;;  %v3129_v2 = vpop.f32.mrb[11].mxu1 }
 0x111   :  { %2165 = vmatpush1.bf16.msra.mxu0 %v2164_v15  ;;  %v465_v30 = vmax.f32 %v257_v24, 0.0  ;;  %v260_v31 = vpop.f32.mrb[12].mxu0  ;;  %v2182_v24 = vpack.c.bf16 %v599_v17, %v597_v16  ;;  %v609_v16 = vld [vmem:[%s4017_s4 + $0x388] sm:$0xff]  ;;  %v611_v17 = vld [vmem:[%s4017_s4 + $0x398] sm:$0xff] }
 0x112   :  { %2167 = vmatprep.subr.bf16.mxu0 %v2166_v18  ;;  %v261_v35 = vadd.f32 %v260_v31, %v2989_v57  ;;  %v262_v37 = vpop.f32.mrb[13].mxu0 }
 0x113   :  { %v263_v40 = vadd.f32 %v262_v37, %v2993_v60  ;;  %730 = vmatprep.mubr.f32.mxu0 %v465_v30  ;;  %v3138_v14 = vpop.f32.mrb[12].mxu1  ;;  %v2184_v37 = vpack.c.bf16 %v598_v26, %v596_v25  ;;  %v2194_v26 = vpack.c.bf16 %v611_v17, %v609_v16 }
 0x114   :  { %v468_v46 = vmax.f32 %v261_v35, 0.0  ;;  %731 = vmatmul.mubr.f32.gmra.mrb[36].mxu0 %v464_v28  ;;  %v3147_v18 = vpop.f32.mrb[13].mxu1 }
 0x115   :  { %2169 = vmatpush1.bf16.msra.mxu0 %v2168_v29  ;;  %v469_v48 = vmax.f32 %v263_v40, 0.0  ;;  %v266_v49 = vpop.f32.mrb[14].mxu0 }
 0x116   :  { %2171 = vmatprep.subr.bf16.mxu0 %v2170_v32  ;;  %v267_v55 = vadd.f32 %v266_v49, %v2989_v57  ;;  %v268_v58 = vpop.f32.mrb[15].mxu0  ;;  %v601_v32 = vld [vmem:[%s4017_s4 + $0x348] sm:$0xff] }
 0x117   :  { %v269_v61 = vadd.f32 %v268_v58, %v2993_v60  ;;  %736 = vmatprep.mubr.f32.mxu0 %v469_v48  ;;  %v3156_v30 = vpop.f32.mrb[14].mxu1  ;;  %v602_v48 = vld [vmem:[%s4017_s4 + $0x350] sm:$0xff]  ;;  %v607_v58 = vld [vmem:[%s4017_s4 + $0x378] sm:$0xff] }
 0x118   :  { %v472_v3 = vmax.f32 %v267_v55, 0.0  ;;  %737 = vmatmul.mubr.f32.gmra.mrb[38].mxu0 %v468_v46  ;;  %v3165_v34 = vpop.f32.mrb[15].mxu1  ;;  %v2186_v46 = vpack.c.bf16 %v603_v33, %v601_v32  ;;  %v605_v55 = vld [vmem:[%s4017_s4 + $0x368] sm:$0xff] }
 0x119   :  { %2173 = vmatpush1.bf16.msra.mxu0 %v2172_v47  ;;  %v473_v5 = vmax.f32 %v269_v61, 0.0  ;;  %v272_v6 = vpop.f32.mrb[16].mxu0  ;;  %v600_v47 = vld [vmem:[%s4017_s4 + $0x340] sm:$0xff] }
 0x11a   :  { %2175 = vmatprep.subr.bf16.mxu0 %v2174_v52  ;;  %v273_v11 = vadd.f32 %v272_v6, %v2989_v57  ;;  %v274_v12 = vpop.f32.mrb[17].mxu0  ;;  %v2188_v1 = vpack.c.bf16 %v602_v48, %v600_v47  ;;  %v2190_v6 = vpack.c.bf16 %v607_v58, %v605_v55  ;;  %v619_v55 = vld [vmem:[%s4017_s4 + $0x3d8] sm:$0xff] }
 0x11b   :  { %v275_v15 = vadd.f32 %v274_v12, %v2993_v60  ;;  %742 = vmatprep.mubr.f32.mxu0 %v473_v5  ;;  %v3175_v53 = vpop.f32.mrb[16].mxu1  ;;  %v3189_v5 = vrot.slane %v2982_v50, %v112_v42 }
 0x11c   :  { %v476_v19 = vmax.f32 %v273_v11, 0.0  ;;  %743 = vmatmul.mubr.f32.gmra.mrb[40].mxu0 %v472_v3  ;;  %v3184_v61 = vpop.f32.mrb[17].mxu1 }
 0x11d   :  { %2177 = vmatpush1.bf16.msra.mxu0 %v2176_v4  ;;  %v477_v21 = vmax.f32 %v275_v15, 0.0  ;;  %v278_v22 = vpop.f32.mrb[18].mxu0  ;;  %v370_v25 = vadd.f32 %v3039_v43, %v3189_v5  ;;  %v613_v43 = vld [vmem:[%s4017_s4 + $0x3a8] sm:$0xff] }
 0x11e   :  { %2179 = vmatprep.subr.bf16.mxu0 %v2178_v7  ;;  %v279_v28 = vadd.f32 %v278_v22, %v2989_v57  ;;  %v280_v29 = vpop.f32.mrb[19].mxu0  ;;  %v604_v7 = vld [vmem:[%s4017_s4 + $0x360] sm:$0xff] }
 0x11f   :  { %v281_v31 = vadd.f32 %v280_v29, %v2993_v60  ;;  %748 = vmatprep.mubr.f32.mxu0 %v477_v21  ;;  %v3198_v12 = vpop.f32.mrb[18].mxu1  ;;  %v2192_v21 = vpack.c.bf16 %v606_v8, %v604_v7  ;;  %v610_v29 = vld [vmem:[%s4017_s4 + $0x390] sm:$0xff]  ;;  %v447_v47 = vmax.f32 %v370_v25, 0.0  ;;  %v621_v8 = vld [vmem:[%s4017_s4 + $0x3e8] sm:$0xff] }
 0x120   :  { %v480_v35 = vmax.f32 %v279_v28, 0.0  ;;  %749 = vmatmul.mubr.f32.gmra.mrb[42].mxu0 %v476_v19  ;;  %v3207_v19 = vpop.f32.mrb[19].mxu1  ;;  %v608_v28 = vld [vmem:[%s4017_s4 + $0x380] sm:$0xff] }
 0x121   :  { %2181 = vmatpush1.bf16.msra.mxu0 %v2180_v20  ;;  %v481_v40 = vmax.f32 %v281_v31, 0.0  ;;  %v284_v41 = vpop.f32.mrb[20].mxu0 }
 0x122   :  { %2183 = vmatprep.subr.bf16.mxu0 %v2182_v24  ;;  %v285_v49 = vadd.f32 %v284_v41, %v2989_v57  ;;  %v286_v52 = vpop.f32.mrb[21].mxu0 }
 0x123   :  { %v287_v54 = vadd.f32 %v286_v52, %v2993_v60  ;;  %754 = vmatprep.mubr.f32.mxu0 %v481_v40  ;;  %v3218_v33 = vpop.f32.mrb[20].mxu1 }
 0x124   :  { %v484_v63 = vmax.f32 %v285_v49, 0.0  ;;  %755 = vmatmul.mubr.f32.gmra.mrb[44].mxu0 %v480_v35  ;;  %v3227_v40 = vpop.f32.mrb[21].mxu1  ;;  %v614_v49 = vld [vmem:[%s4017_s4 + $0x3b0] sm:$0xff] }
 0x125   :  { %2185 = vmatpush1.bf16.msra.mxu0 %v2184_v37  ;;  %v485_v3 = vmax.f32 %v287_v54, 0.0  ;;  %v290_v4 = vpop.f32.mrb[22].mxu0  ;;  %v615_v37 = vld [vmem:[%s4017_s4 + $0x3b8] sm:$0xff]  ;;  %v617_v54 = vld [vmem:[%s4017_s4 + $0x3c8] sm:$0xff] }
 0x126   :  { %2187 = vmatprep.subr.bf16.mxu0 %v2186_v46  ;;  %v291_v10 = vadd.f32 %v290_v4, %v2989_v57  ;;  %v292_v11 = vpop.f32.mrb[23].mxu0  ;;  %v2198_v48 = vpack.c.bf16 %v615_v37, %v613_v43  ;;  %v616_v4 = vld [vmem:[%s4017_s4 + $0x3c0] sm:$0xff] }
 0x127   :  { %v293_v15 = vadd.f32 %v292_v11, %v2993_v60  ;;  %760 = vmatprep.mubr.f32.mxu0 %v485_v3  ;;  %v3235_v52 = vpop.f32.mrb[22].mxu1  ;;  %v2202_v3 = vpack.c.bf16 %v619_v55, %v617_v54 }
 0x128   :  { %v488_v20 = vmax.f32 %v291_v10, 0.0  ;;  %761 = vmatmul.mubr.f32.gmra.mrb[46].mxu0 %v484_v63  ;;  %v3243_v58 = vpop.f32.mrb[23].mxu1  ;;  %v623_v10 = vld [vmem:[%s4017_s4 + $0x3f8] sm:$0xff] }
 0x129   :  { %2189 = vmatpush1.bf16.msra.mxu0 %v2188_v1  ;;  %v489_v22 = vmax.f32 %v293_v15, 0.0  ;;  %v296_v24 = vpop.f32.mrb[24].mxu0  ;;  %v108_v1 = vsub.s32 2, %v2974_v36  ;;  %v2206_v17 = vpack.c.bf16 %v623_v10, %v621_v8 }
 0x12a   :  { %2191 = vmatprep.subr.bf16.mxu0 %v2190_v6  ;;  %v297_v31 = vadd.f32 %v296_v24, %v2989_v57  ;;  %v298_v32 = vpop.f32.mrb[25].mxu0  ;;  %v2196_v57 = vpack.c.bf16 %v610_v29, %v608_v28  ;;  %v618_v6 = vld [vmem:[%s4017_s4 + $0x3d0] sm:$0xff] }
 0x12b   :  { %v299_v35 = vadd.f32 %v298_v32, %v2993_v60  ;;  %766 = vmatprep.mubr.f32.mxu0 %v489_v22  ;;  %v612_v60 = vld [vmem:[%s4017_s4 + $0x3a0] sm:$0xff]  ;;  %v3252_v7 = vpop.f32.mrb[24].mxu1  ;;  %v2204_v15 = vpack.c.bf16 %v618_v6, %v616_v4  ;;  %v3265_v16 = vrot.slane %v2982_v50, %v108_v1  ;;  %v376_v22 = vadd.f32 %v3057_v62, %v3189_v5 }
 0x12c   :  { %v492_v41 = vmax.f32 %v297_v31, 0.0  ;;  %767 = vmatmul.mubr.f32.gmra.mrb[48].mxu0 %v488_v20  ;;  %v2200_v63 = vpack.c.bf16 %v614_v49, %v612_v60  ;;  %v3260_v11 = vpop.f32.mrb[25].mxu1  ;;  %v620_v20 = vld [vmem:[%s4017_s4 + $0x3e0] sm:$0xff]  ;;  %v388_v62 = vadd.f32 %v3093_v27, %v3189_v5  ;;  %v400_v27 = vadd.f32 %v3129_v2, %v3189_v5 }
 0x12d   :  { %2193 = vmatpush1.bf16.msra.mxu0 %v2192_v21  ;;  %v493_v46 = vmax.f32 %v299_v35, 0.0  ;;  %v622_v21 = vld [vmem:[%s4017_s4 + $0x3f0] sm:$0xff]  ;;  %v368_v25 = vadd.f32 %v3030_v39, %v3265_v16  ;;  %v451_v50 = vmax.f32 %v376_v22, 0.0  ;;  %v374_v29 = vadd.f32 %v3048_v56, %v3265_v16  ;;  %v1040_v22 = vld [vmem:[#allocation2 + $0x140] sm:$0xff] }
 0x12e   :  { %2195 = vmatprep.subr.bf16.mxu0 %v2194_v26  ;;  %v2208_v24 = vpack.c.bf16 %v622_v21, %v620_v20  ;;  %v382_v26 = vadd.f32 %v3075_v13, %v3189_v5  ;;  %v380_v39 = vadd.f32 %v3066_v9, %v3265_v16  ;;  %v459_v35 = vmax.f32 %v388_v62, 0.0  ;;  %v1041_v20 = vld [vmem:[#allocation2 + $0x148] sm:$0xff]  ;;  %v1056_v62 = vld [vmem:[#allocation2 + $0x1c0] sm:$0xff] }
 0x12f   :  { %772 = vmatprep.mubr.f32.mxu0 %v493_v46  ;;  %v446_v28 = vmax.f32 %v368_v25, 0.0  ;;  %v450_v32 = vmax.f32 %v374_v29, 0.0  ;;  %v394_v13 = vadd.f32 %v3111_v45, %v3189_v5  ;;  %v386_v56 = vadd.f32 %v3084_v23, %v3265_v16  ;;  %v1045_v21 = vld [vmem:[#allocation2 + $0x168] sm:$0xff] }
 0x130   :  { %773 = vmatmul.mubr.f32.gmra.mrb[50].mxu0 %v492_v41  ;;  %v455_v31 = vmax.f32 %v382_v26, 0.0  ;;  %v454_v43 = vmax.f32 %v380_v39, 0.0  ;;  %v392_v9 = vadd.f32 %v3102_v38, %v3265_v16  ;;  %v406_v45 = vadd.f32 %v3147_v18, %v3189_v5  ;;  %v1053_v25 = vld [vmem:[#allocation2 + $0x1a8] sm:$0xff]  ;;  %v1048_v26 = vld [vmem:[#allocation2 + $0x180] sm:$0xff] }
 0x131   :  { %2197 = vmatpush1.bf16.msra.mxu0 %v2196_v57  ;;  %843 = vmatprep.mubr.f32.mxu0 %v447_v47  ;;  %v463_v37 = vmax.f32 %v394_v13, 0.0  ;;  %v458_v41 = vmax.f32 %v386_v56, 0.0  ;;  %v467_v57 = vmax.f32 %v400_v27, 0.0  ;;  %v398_v23 = vadd.f32 %v3120_v59, %v3265_v16  ;;  %v1007_v13 = vld [vmem:[#allocation2 + $0x38] sm:$0xff]  ;;  %v624_v56 = vld [vmem:[%s4018_s5] sm:$0x3] }
 0x132   :  { %2199 = vmatprep.subr.bf16.mxu0 %v2198_v48  ;;  %v462_v46 = vmax.f32 %v392_v9, 0.0  ;;  %v471_v47 = vmax.f32 %v406_v45, 0.0  ;;  %v412_v2 = vadd.f32 %v3165_v34, %v3189_v5  ;;  %v404_v38 = vadd.f32 %v3138_v14, %v3265_v16 }
 0x133   :  { %v466_v48 = vmax.f32 %v398_v23, 0.0  ;;  %v418_v18 = vadd.f32 %v3184_v61, %v3189_v5  ;;  %v410_v59 = vadd.f32 %v3156_v30, %v3265_v16  ;;  %v424_v34 = vadd.f32 %v3207_v19, %v3189_v5 }
 0x134   :  { %v475_v60 = vmax.f32 %v412_v2, 0.0  ;;  %v470_v49 = vmax.f32 %v404_v38, 0.0  ;;  %v416_v14 = vadd.f32 %v3175_v53, %v3265_v16  ;;  %v430_v61 = vadd.f32 %v3227_v40, %v3189_v5 }
 0x135   :  { %2201 = vmatpush1.bf16.msra.mxu0 %v2200_v63  ;;  %v479_v54 = vmax.f32 %v418_v18, 0.0  ;;  %v474_v55 = vmax.f32 %v410_v59, 0.0  ;;  %v483_v63 = vmax.f32 %v424_v34, 0.0  ;;  %v422_v30 = vadd.f32 %v3198_v12, %v3265_v16 }
 0x136   :  { %2203 = vmatprep.subr.bf16.mxu0 %v2202_v3  ;;  %v478_v3 = vmax.f32 %v416_v14, 0.0  ;;  %v487_v4 = vmax.f32 %v430_v61, 0.0  ;;  %v436_v19 = vadd.f32 %v3243_v58, %v3189_v5  ;;  %v428_v53 = vadd.f32 %v3218_v33, %v3265_v16 }
 0x137   :  { %v482_v6 = vmax.f32 %v422_v30, 0.0  ;;  %v442_v40 = vadd.f32 %v3260_v11, %v3189_v5  ;;  %v434_v12 = vadd.f32 %v3235_v52, %v3265_v16  ;;  %v440_v58 = vadd.f32 %v3252_v7, %v3265_v16  ;;  %v1044_v5 = vld [vmem:[#allocation2 + $0x160] sm:$0xff]  ;;  %v1049_v52 = vld [vmem:[#allocation2 + $0x188] sm:$0xff] }
 0x138   :  { %v491_v8 = vmax.f32 %v436_v19, 0.0  ;;  %v486_v10 = vmax.f32 %v428_v53, 0.0  ;;  %v2232_v11 = vpack.c.bf16 %v1044_v5, %v1040_v22  ;;  %v1057_v7 = vld [vmem:[#allocation2 + $0x1c8] sm:$0xff]  ;;  %v3330_v27 = vrot.slane %v624_v56, %v2985_v51 }
 0x139   :  { %2205 = vmatpush1.bf16.msra.mxu0 %v2204_v15  ;;  %v495_v15 = vmax.f32 %v442_v40, 0.0  ;;  %v494_v33 = vmax.f32 %v440_v58, 0.0  ;;  %v1061_v16 = vld [vmem:[#allocation2 + $0x1e8] sm:$0xff]  ;;  %v1002_v40 = vld [vmem:[#allocation2 + $0x10] sm:$0xff]  ;;  %v1011_v58 = vld [vmem:[#allocation2 + $0x58] sm:$0xff] }
 0x13a   :  { %2207 = vmatprep.subr.bf16.mxu0 %v2206_v17  ;;  %v490_v17 = vmax.f32 %v434_v12, 0.0  ;;  %v962_v5 = vld [vmem:[%s4014_s1 + $0x8] sm:$0xff] }
 0x13d   :  { %2209 = vmatpush1.bf16.msra.mxu0 %v2208_v24  ;;  %v2230_v24 = vpack.c.bf16 %v1045_v21, %v1041_v20 }
 0x13f   :  { %2231 = vmatprep.subr.bf16.mxu1 %v2230_v24 }
 0x140   :  { %844 = vmatmul.mubr.f32.vlgmr.msra.gmra.mrb[26].mxu0 %v446_v28  ;;  %2233 = vmatpush1.bf16.msra.mxu1 %v2232_v11  ;;  %v1052_v28 = vld [vmem:[#allocation2 + $0x1a0] sm:$0xff] }
 0x141   :  { %849 = vmatprep.mubr.f32.mxu0 %v451_v50  ;;  %v2234_v50 = vpack.c.bf16 %v1053_v25, %v1049_v52  ;;  %v2236_v29 = vpack.c.bf16 %v1052_v28, %v1048_v26  ;;  %v1010_v26 = vld [vmem:[#allocation2 + $0x50] sm:$0xff] }
 0x142   :  { %v1014_v28 = vld [vmem:[#allocation2 + $0x70] sm:$0xff] }
 0x143   :  { %2235 = vmatprep.subr.bf16.mxu1 %v2234_v50 }
 0x144   :  { %850 = vmatmul.mubr.f32.gmra.mrb[28].mxu0 %v450_v32  ;;  %2237 = vmatpush1.bf16.msra.mxu1 %v2236_v29  ;;  %v1060_v32 = vld [vmem:[#allocation2 + $0x1e0] sm:$0xff] }
 0x145   :  { %855 = vmatprep.mubr.f32.mxu0 %v455_v31  ;;  %v2238_v31 = vpack.c.bf16 %v1061_v16, %v1057_v7  ;;  %v2240_v39 = vpack.c.bf16 %v1060_v32, %v1056_v62  ;;  %v1023_v62 = vld [vmem:[#allocation2 + $0xb8] sm:$0xff] }
 0x147   :  { %2239 = vmatprep.subr.bf16.mxu1 %v2238_v31  ;;  %v1019_v31 = vld [vmem:[#allocation2 + $0x98] sm:$0xff] }
 0x148   :  { %856 = vmatmul.mubr.f32.gmra.mrb[30].mxu0 %v454_v43  ;;  %2241 = vmatpush1.bf16.msra.mxu1 %v2240_v39 }
 0x149   :  { %861 = vmatprep.mubr.f32.mxu0 %v459_v35  ;;  %v1003_v35 = vld [vmem:[#allocation2 + $0x18] sm:$0xff] }
 0x14a   :  { %v2242_v43 = vpack.c.bf16 %v1007_v13, %v1003_v35  ;;  %v2248_v13 = vpack.c.bf16 %v1014_v28, %v1010_v26  ;;  %v1043_v28 = vld [vmem:[#allocation2 + $0x158] sm:$0xff] }
 0x14c   :  { %862 = vmatmul.mubr.f32.gmra.mrb[32].mxu0 %v458_v41  ;;  %2243 = vmatprep.subr.bf16.mxu1 %v2242_v43  ;;  %v963_v43 = vld [vmem:[%s4014_s1 + $0x10] sm:$0xff] }
 0x14d   :  { %867 = vmatprep.mubr.f32.mxu0 %v463_v37  ;;  %v3327_v37 = vrot.slane %v624_v56, %v2977_v44 }
 0x150   :  { %868 = vmatmul.mubr.f32.gmra.mrb[34].mxu0 %v462_v46 }
 0x151   :  { %873 = vmatprep.mubr.f32.mxu0 %v467_v57 }
 0x154   :  { %874 = vmatmul.mubr.f32.gmra.mrb[36].mxu0 %v466_v48 }
 0x155   :  { %879 = vmatprep.mubr.f32.mxu0 %v471_v47 }
 0x158   :  { %880 = vmatmul.mubr.f32.gmra.mrb[38].mxu0 %v470_v49 }
 0x159   :  { %885 = vmatprep.mubr.f32.mxu0 %v475_v60 }
 0x15c   :  { %886 = vmatmul.mubr.f32.gmra.mrb[40].mxu0 %v474_v55 }
 0x15d   :  { %891 = vmatprep.mubr.f32.mxu0 %v479_v54 }
 0x160   :  { %892 = vmatmul.mubr.f32.gmra.mrb[42].mxu0 %v478_v3 }
 0x161   :  { %897 = vmatprep.mubr.f32.mxu0 %v483_v63 }
 0x164   :  { %898 = vmatmul.mubr.f32.gmra.mrb[44].mxu0 %v482_v6  ;;  %v961_v6 = vld [vmem:[%s4014_s1] sm:$0xff] }
 0x165   :  { %903 = vmatprep.mubr.f32.mxu0 %v487_v4 }
 0x168   :  { %904 = vmatmul.mubr.f32.gmra.mrb[46].mxu0 %v486_v10  ;;  %v1006_v10 = vld [vmem:[#allocation2 + $0x30] sm:$0xff] }
 0x169   :  { %909 = vmatprep.mubr.f32.mxu0 %v491_v8  ;;  %v2244_v24 = vpack.c.bf16 %v1006_v10, %v1002_v40  ;;  %v1035_v40 = vld [vmem:[#allocation2 + $0x118] sm:$0xff] }
 0x16a   :  { %v1039_v10 = vld [vmem:[#allocation2 + $0x138] sm:$0xff] }
 0x16c   :  { %910 = vmatmul.mubr.f32.gmra.mrb[48].mxu0 %v490_v17 }
 0x16d   :  { %915 = vmatprep.mubr.f32.mxu0 %v495_v15 }
 0x170   :  { %916 = vmatmul.mubr.f32.gmra.mrb[50].mxu0 %v494_v33  ;;  %v1015_v33 = vld [vmem:[#allocation2 + $0x78] sm:$0xff] }
 0x171   :  { %v2246_v50 = vpack.c.bf16 %v1015_v33, %v1011_v58 }
 0x213   :  { %v845_v41 = vpop.f32.mrb[26].mxu0 }
 0x214   :  { %v2354_v9 = vadd.f32 %v845_v41, %v3327_v37  ;;  %v847_v57 = vpop.f32.mrb[27].mxu0 }
 0x215   :  { %v2355_v45 = vadd.f32 %v847_v57, %v3330_v27  ;;  %v2250_v57 = vpack.c.bf16 %v1023_v62, %v1019_v31  ;;  %v966_v31 = vld [vmem:[%s4014_s1 + $0x28] sm:$0xff] }
 0x216   :  { %1846 = vst [vmem:[%s4024_s11] sm:$0xff] %v2354_v9 }
 0x217   :  { %v922_v46 = vmul.f32 0.5, %v2355_v45  ;;  %1847 = vst [vmem:[%s4024_s11 + $0x8] sm:$0xff] %v2355_v45  ;;  %v851_v23 = vpop.f32.mrb[28].mxu0  ;;  %v1018_v45 = vld [vmem:[#allocation2 + $0x90] sm:$0xff] }
 0x218   :  { %v3341_v47 = vadd.f32 %v851_v23, %v3327_v37  ;;  %v853_v2 = vpop.f32.mrb[29].mxu0 }
 0x219   :  { %v935_v48 = vmul.f32 1.442695, %v922_v46  ;;  %v2357_v38 = vadd.f32 %v853_v2, %v3330_v27  ;;  %v1022_v46 = vld [vmem:[#allocation2 + $0xb0] sm:$0xff] }
 0x21a   :  { %1848 = vst [vmem:[%s4024_s11 + $0x10] sm:$0xff] %v3341_v47 }
 0x21b   :  { %2410 = vpow2.f32 %v935_v48  ;;  %v923_v60 = vmul.f32 0.5, %v2357_v38  ;;  %1849 = vst [vmem:[%s4024_s11 + $0x18] sm:$0xff] %v2357_v38  ;;  %v857_v18 = vpop.f32.mrb[30].mxu0  ;;  %v1027_v38 = vld [vmem:[#allocation2 + $0xd8] sm:$0xff] }
 0x21c   :  { %v3352_v49 = vadd.f32 %v857_v18, %v3327_v37  ;;  %v859_v59 = vpop.f32.mrb[31].mxu0 }
 0x21d   :  { %v937_v54 = vmul.f32 1.442695, %v923_v60  ;;  %v2359_v34 = vadd.f32 %v859_v59, %v3330_v27  ;;  %v1031_v60 = vld [vmem:[#allocation2 + $0xf8] sm:$0xff] }
 0x21e   :  { %1850 = vst [vmem:[%s4024_s11 + $0x20] sm:$0xff] %v3352_v49 }
 0x21f   :  { %2412 = vpow2.f32 %v937_v54  ;;  %v924_v55 = vmul.f32 0.5, %v2359_v34  ;;  %1851 = vst [vmem:[%s4024_s11 + $0x28] sm:$0xff] %v2359_v34  ;;  %v863_v14 = vpop.f32.mrb[32].mxu0  ;;  %v964_v54 = vld [vmem:[%s4014_s1 + $0x18] sm:$0xff]  ;;  %v2252_v34 = vpack.c.bf16 %v1022_v46, %v1018_v45 }
 0x220   :  { %v3363_v63 = vadd.f32 %v863_v14, %v3327_v37  ;;  %v865_v61 = vpop.f32.mrb[33].mxu0 }
 0x221   :  { %v939_v3 = vmul.f32 1.442695, %v924_v55  ;;  %v2361_v30 = vadd.f32 %v865_v61, %v3330_v27 }
 0x222   :  { %1852 = vst [vmem:[%s4024_s11 + $0x30] sm:$0xff] %v3363_v63 }
 0x223   :  { %2414 = vpow2.f32 %v939_v3  ;;  %v925_v4 = vmul.f32 0.5, %v2361_v30  ;;  %1853 = vst [vmem:[%s4024_s11 + $0x38] sm:$0xff] %v2361_v30  ;;  %v869_v19 = vpop.f32.mrb[34].mxu0  ;;  %v2254_v3 = vpack.c.bf16 %v1031_v60, %v1027_v38  ;;  %v1026_v30 = vld [vmem:[#allocation2 + $0xd0] sm:$0xff] }
 0x224   :  { %v3377_v53 = vadd.f32 %v869_v19, %v3327_v37  ;;  %v871_v8 = vpop.f32.mrb[35].mxu0  ;;  %v967_v60 = vld [vmem:[%s4014_s1 + $0x30] sm:$0xff] }
 0x225   :  { %v2411_v12 = vpop.eup %2410  ;;  %v941_v15 = vmul.f32 1.442695, %v925_v4  ;;  %v2363_v17 = vadd.f32 %v871_v8, %v3330_v27  ;;  %v1030_v4 = vld [vmem:[#allocation2 + $0xf0] sm:$0xff] }
 0x226   :  { %1854 = vst [vmem:[%s4024_s11 + $0x40] sm:$0xff] %v3377_v53  ;;  %v974_v20 = vmul.f32 %v2411_v12, %v961_v6  ;;  %v2256_v58 = vpack.c.bf16 %v1030_v4, %v1026_v30 }
 0x227   :  { %2416 = vpow2.f32 %v941_v15  ;;  %v926_v21 = vmul.f32 0.5, %v2363_v17  ;;  %1855 = vst [vmem:[%s4024_s11 + $0x48] sm:$0xff] %v2363_v17  ;;  %v875_v22 = vpop.f32.mrb[36].mxu0  ;;  %v965_v17 = vld [vmem:[%s4014_s1 + $0x20] sm:$0xff] }
 0x228   :  { %v3391_v11 = vadd.f32 %v875_v22, %v3327_v37  ;;  %v877_v52 = vpop.f32.mrb[37].mxu0  ;;  %v3393_v25 = vadd.f32 %v2354_v9, %v974_v20  ;;  %v2258_v22 = vpack.c.bf16 %v1039_v10, %v1035_v40 }
 0x229   :  { %v2413_v29 = vpop.eup %2412  ;;  %v943_v7 = vmul.f32 1.442695, %v926_v21  ;;  %v2365_v16 = vadd.f32 %v877_v52, %v3330_v27 }
 0x22a   :  { %1856 = vst [vmem:[%s4024_s11 + $0x50] sm:$0xff] %v3391_v11  ;;  %1151 = vmatmul.mubr.f32.vlgmr.msra.gmra.mrb[26].mxu1 %v3393_v25  ;;  %v975_v32 = vmul.f32 %v2413_v29, %v962_v5  ;;  %v1038_v5 = vld [vmem:[#allocation2 + $0x130] sm:$0xff]  ;;  %v1047_v29 = vld [vmem:[#allocation2 + $0x178] sm:$0xff] }
 0x22b   :  { %2418 = vpow2.f32 %v943_v7  ;;  %v927_v39 = vmul.f32 0.5, %v2365_v16  ;;  %1857 = vst [vmem:[%s4024_s11 + $0x58] sm:$0xff] %v2365_v16  ;;  %2245 = vmatpush1.bf16.msra.mxu1 %v2244_v24  ;;  %v881_v35 = vpop.f32.mrb[38].mxu0  ;;  %1156 = vmatprep.mubr.f32.mxu1 %v2515_v0  ;;  %v1034_v24 = vld [vmem:[#allocation2 + $0x110] sm:$0xff] }
 0x22c   :  { %v3409_v56 = vadd.f32 %v881_v35, %v3327_v37  ;;  %v883_v41 = vpop.f32.mrb[39].mxu0  ;;  %v3412_v9 = vadd.f32 %v3341_v47, %v975_v32  ;;  %2247 = vmatprep.subr.bf16.mxu1 %v2246_v50  ;;  %v2260_v62 = vpack.c.bf16 %v1038_v5, %v1034_v24  ;;  %v1062_v24 = vld [vmem:[#allocation2 + $0x1f0] sm:$0xff] }
 0x22d   :  { %v2415_v23 = vpop.eup %2414  ;;  %v945_v2 = vmul.f32 1.442695, %v927_v39  ;;  %v2367_v48 = vadd.f32 %v883_v41, %v3330_v27  ;;  %v1046_v41 = vld [vmem:[#allocation2 + $0x170] sm:$0xff] }
 0x22e   :  { %1858 = vst [vmem:[%s4024_s11 + $0x60] sm:$0xff] %v3409_v56  ;;  %1157 = vmatmul.mubr.f32.gmra.mrb[28].mxu1 %v3412_v9  ;;  %v976_v18 = vmul.f32 %v2415_v23, %v963_v43  ;;  %v1042_v43 = vld [vmem:[#allocation2 + $0x150] sm:$0xff]  ;;  %v1051_v23 = vld [vmem:[#allocation2 + $0x198] sm:$0xff] }
 0x22f   :  { %2420 = vpow2.f32 %v945_v2  ;;  %v928_v47 = vmul.f32 0.5, %v2367_v48  ;;  %1859 = vst [vmem:[%s4024_s11 + $0x68] sm:$0xff] %v2367_v48  ;;  %v887_v59 = vpop.f32.mrb[40].mxu0  ;;  %1162 = vmatprep.mubr.f32.mxu1 %v2515_v0  ;;  %2249 = vmatpush1.bf16.msra.mxu1 %v2248_v13  ;;  %v2262_v13 = vpack.c.bf16 %v1047_v29, %v1043_v28  ;;  %v1055_v2 = vld [vmem:[#allocation2 + $0x1b8] sm:$0xff]  ;;  %v1441_v28 = vld [vmem:[%s4021_s8 + $0x88] sm:$0xff] }
 0x230   :  { %v3428_v55 = vadd.f32 %v887_v59, %v3327_v37  ;;  %v889_v14 = vpop.f32.mrb[41].mxu0  ;;  %v3431_v61 = vadd.f32 %v3352_v49, %v976_v18  ;;  %2251 = vmatprep.subr.bf16.mxu1 %v2250_v57  ;;  %v2264_v18 = vpack.c.bf16 %v1046_v41, %v1042_v43 }
 0x231   :  { %v2417_v19 = vpop.eup %2416  ;;  %v947_v6 = vmul.f32 1.442695, %v928_v47  ;;  %v2369_v8 = vadd.f32 %v889_v14, %v3330_v27  ;;  %v1050_v14 = vld [vmem:[#allocation2 + $0x190] sm:$0xff] }
 0x232   :  { %1860 = vst [vmem:[%s4024_s11 + $0x70] sm:$0xff] %v3428_v55  ;;  %1163 = vmatmul.mubr.f32.gmra.mrb[30].mxu1 %v3431_v61  ;;  %v977_v12 = vmul.f32 %v2417_v19, %v964_v54 }
 0x233   :  { %2422 = vpow2.f32 %v947_v6  ;;  %v929_v49 = vmul.f32 0.5, %v2369_v8  ;;  %1861 = vst [vmem:[%s4024_s11 + $0x78] sm:$0xff] %v2369_v8  ;;  %v893_v15 = vpop.f32.mrb[42].mxu0  ;;  %1168 = vmatprep.mubr.f32.mxu1 %v2515_v0  ;;  %2253 = vmatpush1.bf16.msra.mxu1 %v2252_v34  ;;  %v2266_v34 = vpack.c.bf16 %v1055_v2, %v1051_v23  ;;  %v1059_v6 = vld [vmem:[#allocation2 + $0x1d8] sm:$0xff] }
 0x234   :  { %v3447_v33 = vadd.f32 %v893_v15, %v3327_v37  ;;  %v895_v20 = vpop.f32.mrb[43].mxu0  ;;  %v3450_v21 = vadd.f32 %v3363_v63, %v977_v12  ;;  %2255 = vmatprep.subr.bf16.mxu1 %v2254_v3  ;;  %v1054_v3 = vld [vmem:[#allocation2 + $0x1b0] sm:$0xff]  ;;  %v1063_v8 = vld [vmem:[#allocation2 + $0x1f8] sm:$0xff] }
 0x235   :  { %v2419_v52 = vpop.eup %2418  ;;  %v949_v50 = vmul.f32 1.442695, %v929_v49  ;;  %v2371_v26 = vadd.f32 %v895_v20, %v3330_v27  ;;  %v968_v12 = vld [vmem:[%s4014_s1 + $0x38] sm:$0xff]  ;;  %v2268_v49 = vpack.c.bf16 %v1054_v3, %v1050_v14  ;;  %v2270_v20 = vpack.c.bf16 %v1063_v8, %v1059_v6  ;;  %v1442_v6 = vld [vmem:[%s4021_s8 + $0x90] sm:$0xff] }
 0x236   :  { %1862 = vst [vmem:[%s4024_s11 + $0x80] sm:$0xff] %v3447_v33  ;;  %1169 = vmatmul.mubr.f32.gmra.mrb[32].mxu1 %v3450_v21  ;;  %v978_v7 = vmul.f32 %v2419_v52, %v965_v17  ;;  %v1443_v8 = vld [vmem:[%s4021_s8 + $0x98] sm:$0xff] }
 0x237   :  { %2424 = vpow2.f32 %v949_v50  ;;  %v930_v63 = vmul.f32 0.5, %v2371_v26  ;;  %1863 = vst [vmem:[%s4024_s11 + $0x88] sm:$0xff] %v2371_v26  ;;  %v899_v16 = vpop.f32.mrb[44].mxu0  ;;  %1174 = vmatprep.mubr.f32.mxu1 %v2515_v0  ;;  %2257 = vmatpush1.bf16.msra.mxu1 %v2256_v58  ;;  %v1440_v26 = vld [vmem:[%s4021_s8 + $0x80] sm:$0xff] }
 0x238   :  { %v3466_v32 = vadd.f32 %v899_v16, %v3327_v37  ;;  %v901_v39 = vpop.f32.mrb[45].mxu0  ;;  %v3469_v35 = vadd.f32 %v3377_v53, %v978_v7  ;;  %2259 = vmatprep.subr.bf16.mxu1 %v2258_v22  ;;  %v1058_v22 = vld [vmem:[#allocation2 + $0x1d0] sm:$0xff] }
 0x239   :  { %v2421_v57 = vpop.eup %2420  ;;  %v951_v45 = vmul.f32 1.442695, %v930_v63  ;;  %v2373_v46 = vadd.f32 %v901_v39, %v3330_v27  ;;  %v969_v63 = vld [vmem:[%s4014_s1 + $0x40] sm:$0xff]  ;;  %v2272_v16 = vpack.c.bf16 %v1062_v24, %v1058_v22  ;;  %v1429_v24 = vld [vmem:[%s4021_s8 + $0x28] sm:$0xff] }
 0x23a   :  { %1864 = vst [vmem:[%s4024_s11 + $0x90] sm:$0xff] %v3466_v32  ;;  %1175 = vmatmul.mubr.f32.gmra.mrb[34].mxu1 %v3469_v35  ;;  %v979_v48 = vmul.f32 %v2421_v57, %v966_v31  ;;  %v1428_v22 = vld [vmem:[%s4021_s8 + $0x20] sm:$0xff] }
 0x23b   :  { %2426 = vpow2.f32 %v951_v45  ;;  %v931_v53 = vmul.f32 0.5, %v2373_v46  ;;  %1865 = vst [vmem:[%s4024_s11 + $0x98] sm:$0xff] %v2373_v46  ;;  %v905_v38 = vpop.f32.mrb[46].mxu0  ;;  %1180 = vmatprep.mubr.f32.mxu1 %v2515_v0  ;;  %2261 = vmatpush1.bf16.msra.mxu1 %v2260_v62 }
 0x23c   :  { %v3485_v47 = vadd.f32 %v905_v38, %v3327_v37  ;;  %v907_v59 = vpop.f32.mrb[47].mxu0  ;;  %v3488_v54 = vadd.f32 %v3391_v11, %v979_v48  ;;  %2263 = vmatprep.subr.bf16.mxu1 %v2262_v13  ;;  %v2274_v13 = vpack.c.bf16 %v1441_v28, %v1440_v26  ;;  %v971_v48 = vld [vmem:[%s4014_s1 + $0x50] sm:$0xff]  ;;  %v1431_v28 = vld [vmem:[%s4021_s8 + $0x38] sm:$0xff] }
 0x23d   :  { %v2423_v30 = vpop.eup %2422  ;;  %v953_v4 = vmul.f32 1.442695, %v931_v53  ;;  %v2375_v19 = vadd.f32 %v907_v59, %v3330_v27  ;;  %v1430_v26 = vld [vmem:[%s4021_s8 + $0x30] sm:$0xff] }
 0x23e   :  { %1866 = vst [vmem:[%s4024_s11 + $0xa0] sm:$0xff] %v3485_v47  ;;  %1181 = vmatmul.mubr.f32.gmra.mrb[36].mxu1 %v3488_v54  ;;  %v980_v40 = vmul.f32 %v2423_v30, %v967_v60  ;;  %v972_v60 = vld [vmem:[%s4014_s1 + $0x58] sm:$0xff] }
 0x23f   :  { %2428 = vpow2.f32 %v953_v4  ;;  %v932_v11 = vmul.f32 0.5, %v2375_v19  ;;  %1867 = vst [vmem:[%s4024_s11 + $0xa8] sm:$0xff] %v2375_v19  ;;  %v911_v10 = vpop.f32.mrb[48].mxu0  ;;  %1186 = vmatprep.mubr.f32.mxu1 %v2515_v0  ;;  %2265 = vmatpush1.bf16.msra.mxu1 %v2264_v18  ;;  %v1424_v4 = vld [vmem:[%s4021_s8] sm:$0xff]  ;;  %v1425_v19 = vld [vmem:[%s4021_s8 + $0x8] sm:$0xff] }
 0x240   :  { %v2376_v15 = vadd.f32 %v911_v10, %v3327_v37  ;;  %v913_v17 = vpop.f32.mrb[49].mxu0  ;;  %v3505_v58 = vadd.f32 %v3409_v56, %v980_v40  ;;  %2267 = vmatprep.subr.bf16.mxu1 %v2266_v34  ;;  %v2276_v40 = vpack.c.bf16 %v1425_v19, %v1424_v4  ;;  %v1426_v10 = vld [vmem:[%s4021_s8 + $0x10] sm:$0xff]  ;;  %v1460_v19 = vld [vmem:[%s4021_s8 + $0x120] sm:$0xff] }
 0x241   :  { %v2425_v5 = vpop.eup %2424  ;;  %v955_v52 = vmul.f32 1.442695, %v932_v11  ;;  %v2377_v50 = vadd.f32 %v913_v17, %v3330_v27  ;;  %v2278_v11 = vpack.c.bf16 %v1443_v8, %v1442_v6  ;;  %v1461_v6 = vld [vmem:[%s4021_s8 + $0x128] sm:$0xff] }
 0x242   :  { %1868 = vst [vmem:[%s4024_s11 + $0xb0] sm:$0xff] %v2376_v15  ;;  %1187 = vmatmul.mubr.f32.gmra.mrb[38].mxu1 %v3505_v58  ;;  %v981_v56 = vmul.f32 %v2425_v5, %v968_v12  ;;  %v1427_v12 = vld [vmem:[%s4021_s8 + $0x18] sm:$0xff]  ;;  %v1446_v5 = vld [vmem:[%s4021_s8 + $0xb0] sm:$0xff]  ;;  %v3735_v8 = vpack.c.bf16 %v1461_v6, %v1460_v19 }
 0x243   :  { %2430 = vpow2.f32 %v955_v52  ;;  %v933_v29 = vmul.f32 0.5, %v2377_v50  ;;  %1869 = vst [vmem:[%s4024_s11 + $0xb8] sm:$0xff] %v2377_v50  ;;  %v917_v7 = vpop.f32.mrb[50].mxu0  ;;  %1192 = vmatprep.mubr.f32.mxu1 %v2515_v0  ;;  %2269 = vmatpush1.bf16.msra.mxu1 %v2268_v49  ;;  %v1444_v49 = vld [vmem:[%s4021_s8 + $0xa0] sm:$0xff]  ;;  %v2280_v17 = vpack.c.bf16 %v1427_v12, %v1426_v10  ;;  %v2284_v52 = vpack.c.bf16 %v1429_v24, %v1428_v22  ;;  %v1462_v12 = vld [vmem:[%s4021_s8 + $0x130] sm:$0xff] }
 0x244   :  { %v2378_v31 = vadd.f32 %v917_v7, %v3327_v37  ;;  %v919_v62 = vpop.f32.mrb[51].mxu0  ;;  %v3527_v39 = vadd.f32 %v3428_v55, %v981_v56  ;;  %2271 = vmatprep.subr.bf16.mxu1 %v2270_v20  ;;  %v970_v37 = vld [vmem:[%s4014_s1 + $0x48] sm:$0xff]  ;;  %v1448_v56 = vld [vmem:[%s4021_s8 + $0xc0] sm:$0xff] }
 0x245   :  { %v2427_v43 = vpop.eup %2426  ;;  %v957_v41 = vmul.f32 1.442695, %v933_v29  ;;  %v2379_v57 = vadd.f32 %v919_v62, %v3330_v27  ;;  %v2288_v29 = vpack.c.bf16 %v1431_v28, %v1430_v26  ;;  %v1464_v24 = vld [vmem:[%s4021_s8 + $0x140] sm:$0xff]  ;;  %v1466_v28 = vld [vmem:[%s4021_s8 + $0x150] sm:$0xff] }
 0x246   :  { %1870 = vst [vmem:[%s4024_s11 + $0xc0] sm:$0xff] %v2378_v31  ;;  %1193 = vmatmul.mubr.f32.gmra.mrb[40].mxu1 %v3527_v39  ;;  %v982_v45 = vmul.f32 %v2427_v43, %v969_v63  ;;  %v1432_v63 = vld [vmem:[%s4021_s8 + $0x40] sm:$0xff]  ;;  %v1434_v43 = vld [vmem:[%s4021_s8 + $0x50] sm:$0xff] }
 0x247   :  { %2432 = vpow2.f32 %v957_v41  ;;  %v934_v46 = vmul.f32 0.5, %v2379_v57  ;;  %1871 = vst [vmem:[%s4024_s11 + $0xc8] sm:$0xff] %v2379_v57  ;;  %1198 = vmatprep.mubr.f32.mxu1 %v2515_v0  ;;  %2273 = vmatpush1.bf16.msra.mxu1 %v2272_v16  ;;  %v1433_v16 = vld [vmem:[%s4021_s8 + $0x48] sm:$0xff]  ;;  %v1435_v41 = vld [vmem:[%s4021_s8 + $0x58] sm:$0xff]  ;;  %v1452_v57 = vld [vmem:[%s4021_s8 + $0xe0] sm:$0xff] }
 0x248   :  { %v3542_v27 = vadd.f32 %v3447_v33, %v982_v45  ;;  %2275 = vmatprep.subr.bf16.mxu1 %v2274_v13  ;;  %v2292_v62 = vpack.c.bf16 %v1433_v16, %v1432_v63  ;;  %v2296_v45 = vpack.c.bf16 %v1435_v41, %v1434_v43  ;;  %v1468_v16 = vld [vmem:[%s4021_s8 + $0x160] sm:$0xff]  ;;  %v1470_v41 = vld [vmem:[%s4021_s8 + $0x170] sm:$0xff] }
 0x249   :  { %v2429_v55 = vpop.eup %2428  ;;  %v959_v23 = vmul.f32 1.442695, %v934_v46 }
 0x24a   :  { %1199 = vmatmul.mubr.f32.gmra.mrb[42].mxu1 %v3542_v27  ;;  %v983_v2 = vmul.f32 %v2429_v55, %v970_v37  ;;  %v1437_v37 = vld [vmem:[%s4021_s8 + $0x68] sm:$0xff] }
 0x24b   :  { %2434 = vpow2.f32 %v959_v23  ;;  %1204 = vmatprep.mubr.f32.mxu1 %v2515_v0  ;;  %v1438_v23 = vld [vmem:[%s4021_s8 + $0x70] sm:$0xff] }
 0x24c   :  { %v3550_v53 = vadd.f32 %v3466_v32, %v983_v2  ;;  %v973_v32 = vld [vmem:[%s4014_s1 + $0x60] sm:$0xff]  ;;  %v1439_v2 = vld [vmem:[%s4021_s8 + $0x78] sm:$0xff] }
 0x24d   :  { %v2431_v38 = vpop.eup %2430 }
 0x24e   :  { %1205 = vmatmul.mubr.f32.gmra.mrb[44].mxu1 %v3550_v53  ;;  %v984_v33 = vmul.f32 %v2431_v38, %v971_v48  ;;  %v2304_v48 = vpack.c.bf16 %v1439_v2, %v1438_v23  ;;  %v1456_v38 = vld [vmem:[%s4021_s8 + $0x100] sm:$0xff] }
 0x24f   :  { %1210 = vmatprep.mubr.f32.mxu1 %v2515_v0 }
 0x250   :  { %v3558_v18 = vadd.f32 %v3485_v47, %v984_v33 }
 0x251   :  { %v2433_v59 = vpop.eup %2432 }
 0x252   :  { %1211 = vmatmul.mubr.f32.gmra.mrb[46].mxu1 %v3558_v18  ;;  %v985_v34 = vmul.f32 %v2433_v59, %v972_v60  ;;  %v1457_v60 = vld [vmem:[%s4021_s8 + $0x108] sm:$0xff]  ;;  %v1475_v59 = vld [vmem:[%s4021_s8 + $0x198] sm:$0xff] }
 0x253   :  { %1216 = vmatprep.mubr.f32.mxu1 %v2515_v0 }
 0x254   :  { %v3565_v14 = vadd.f32 %v2376_v15, %v985_v34  ;;  %v1445_v15 = vld [vmem:[%s4021_s8 + $0xa8] sm:$0xff]  ;;  %v1458_v34 = vld [vmem:[%s4021_s8 + $0x110] sm:$0xff] }
 0x255   :  { %v2435_v3 = vpop.eup %2434  ;;  %v2282_v20 = vpack.c.bf16 %v1445_v15, %v1444_v49  ;;  %v1463_v49 = vld [vmem:[%s4021_s8 + $0x138] sm:$0xff] }
 0x256   :  { %1217 = vmatmul.mubr.f32.gmra.mrb[48].mxu1 %v3565_v14  ;;  %v986_v30 = vmul.f32 %v2435_v3, %v973_v32  ;;  %v3753_v15 = vpack.c.bf16 %v1463_v49, %v1462_v12 }
 0x257   :  { %1222 = vmatprep.mubr.f32.mxu1 %v2515_v0 }
 0x258   :  { %v3569_v47 = vadd.f32 %v2378_v31, %v986_v30  ;;  %v1450_v31 = vld [vmem:[%s4021_s8 + $0xd0] sm:$0xff]  ;;  %v1476_v30 = vld [vmem:[%s4021_s8 + $0x1a0] sm:$0xff] }
 0x25a   :  { %1223 = vmatmul.mubr.f32.gmra.mrb[50].mxu1 %v3569_v47 }
 0x25b   :  { %1293 = vmatprep.mubr.f32.mxu1 %v2515_v0 }
 0x25e   :  { %1294 = vmatmul.mubr.f32.vlgmr.msra.gmra.mrb[52].mxu1 %v3393_v25  ;;  %v1447_v25 = vld [vmem:[%s4021_s8 + $0xb8] sm:$0xff] }
 0x25f   :  { %1299 = vmatprep.mubr.f32.mxu1 %v2515_v0  ;;  %2277 = vmatpush3.bf16.msra.mxu1 %v2276_v40  ;;  %v2286_v50 = vpack.c.bf16 %v1447_v25, %v1446_v5  ;;  %v1478_v40 = vld [vmem:[%s4021_s8 + $0x1b0] sm:$0xff]  ;;  %v1465_v5 = vld [vmem:[%s4021_s8 + $0x148] sm:$0xff] }
 0x260   :  { %2279 = vmatprep.subr.bf16.mxu1 %v2278_v11  ;;  %v1479_v11 = vld [vmem:[%s4021_s8 + $0x1b8] sm:$0xff]  ;;  %v3771_v25 = vpack.c.bf16 %v1465_v5, %v1464_v24 }
 0x261   :  { %v3745_v10 = vpack.c.bf16 %v1479_v11, %v1478_v40 }
 0x262   :  { %1300 = vmatmul.mubr.f32.gmra.mrb[54].mxu1 %v3412_v9  ;;  %v1449_v9 = vld [vmem:[%s4021_s8 + $0xc8] sm:$0xff] }
 0x263   :  { %1305 = vmatprep.mubr.f32.mxu1 %v2515_v0  ;;  %2281 = vmatpush3.bf16.msra.mxu1 %v2280_v17  ;;  %v2290_v7 = vpack.c.bf16 %v1449_v9, %v1448_v56  ;;  %v1480_v17 = vld [vmem:[%s4021_s8 + $0x1c0] sm:$0xff]  ;;  %v1467_v56 = vld [vmem:[%s4021_s8 + $0x158] sm:$0xff] }
 0x264   :  { %2283 = vmatprep.subr.bf16.mxu1 %v2282_v20  ;;  %v1481_v20 = vld [vmem:[%s4021_s8 + $0x1c8] sm:$0xff]  ;;  %v3789_v9 = vpack.c.bf16 %v1467_v56, %v1466_v28 }
 0x265   :  { %v3763_v22 = vpack.c.bf16 %v1481_v20, %v1480_v17 }
 0x266   :  { %1306 = vmatmul.mubr.f32.gmra.mrb[56].mxu1 %v3431_v61  ;;  %v1451_v61 = vld [vmem:[%s4021_s8 + $0xd8] sm:$0xff] }
 0x267   :  { %1311 = vmatprep.mubr.f32.mxu1 %v2515_v0  ;;  %2285 = vmatpush3.bf16.msra.mxu1 %v2284_v52  ;;  %v2294_v13 = vpack.c.bf16 %v1451_v61, %v1450_v31  ;;  %v1482_v52 = vld [vmem:[%s4021_s8 + $0x1d0] sm:$0xff]  ;;  %v1469_v31 = vld [vmem:[%s4021_s8 + $0x168] sm:$0xff] }
 0x268   :  { %2287 = vmatprep.subr.bf16.mxu1 %v2286_v50  ;;  %v1483_v50 = vld [vmem:[%s4021_s8 + $0x1d8] sm:$0xff]  ;;  %v3807_v61 = vpack.c.bf16 %v1469_v31, %v1468_v16 }
 0x269   :  { %v3781_v26 = vpack.c.bf16 %v1483_v50, %v1482_v52 }
 0x26a   :  { %1312 = vmatmul.mubr.f32.gmra.mrb[58].mxu1 %v3450_v21  ;;  %v1453_v21 = vld [vmem:[%s4021_s8 + $0xe8] sm:$0xff] }
 0x26b   :  { %1317 = vmatprep.mubr.f32.mxu1 %v2515_v0  ;;  %2289 = vmatpush3.bf16.msra.mxu1 %v2288_v29  ;;  %v2298_v46 = vpack.c.bf16 %v1453_v21, %v1452_v57  ;;  %v1484_v29 = vld [vmem:[%s4021_s8 + $0x1e0] sm:$0xff]  ;;  %v1471_v57 = vld [vmem:[%s4021_s8 + $0x178] sm:$0xff] }
 0x26c   :  { %2291 = vmatprep.subr.bf16.mxu1 %v2290_v7  ;;  %v1485_v7 = vld [vmem:[%s4021_s8 + $0x1e8] sm:$0xff]  ;;  %v3825_v21 = vpack.c.bf16 %v1471_v57, %v1470_v41 }
 0x26d   :  { %v3799_v63 = vpack.c.bf16 %v1485_v7, %v1484_v29 }
 0x26e   :  { %1318 = vmatmul.mubr.f32.gmra.mrb[60].mxu1 %v3469_v35  ;;  %v1436_v35 = vld [vmem:[%s4021_s8 + $0x60] sm:$0xff] }
 0x26f   :  { %1323 = vmatprep.mubr.f32.mxu1 %v2515_v0  ;;  %2293 = vmatpush3.bf16.msra.mxu1 %v2292_v62  ;;  %v1486_v62 = vld [vmem:[%s4021_s8 + $0x1f0] sm:$0xff] }
 0x270   :  { %2295 = vmatprep.subr.bf16.mxu1 %v2294_v13  ;;  %v1487_v13 = vld [vmem:[%s4021_s8 + $0x1f8] sm:$0xff] }
 0x271   :  { %v3817_v43 = vpack.c.bf16 %v1487_v13, %v1486_v62 }
 0x272   :  { %1324 = vmatmul.mubr.f32.gmra.mrb[62].mxu1 %v3488_v54  ;;  %v2300_v54 = vpack.c.bf16 %v1437_v37, %v1436_v35 }
 0x273   :  { %1329 = vmatprep.mubr.f32.mxu1 %v2515_v0  ;;  %2297 = vmatpush3.bf16.msra.mxu1 %v2296_v45  ;;  %v3832_v45 = vld [vmem:[%s4020_s7] sm:$0xf] }
 0x274   :  { %2299 = vmatprep.subr.bf16.mxu1 %v2298_v46  ;;  %v3836_v46 = vrot.slane %v3832_v45, %v2977_v44  ;;  %v3840_v35 = vrot.slane %v3832_v45, %v2985_v51 }
 0x276   :  { %1330 = vmatmul.mubr.f32.gmra.mrb[64].mxu1 %v3505_v58  ;;  %v1454_v58 = vld [vmem:[%s4021_s8 + $0xf0] sm:$0xff] }
 0x277   :  { %1335 = vmatprep.mubr.f32.mxu1 %v2515_v0  ;;  %2301 = vmatpush3.bf16.msra.mxu1 %v2300_v54 }
 0x27a   :  { %1336 = vmatmul.mubr.f32.gmra.mrb[66].mxu1 %v3527_v39  ;;  %v1455_v39 = vld [vmem:[%s4021_s8 + $0xf8] sm:$0xff] }
 0x27b   :  { %1341 = vmatprep.mubr.f32.mxu1 %v2515_v0  ;;  %v2302_v55 = vpack.c.bf16 %v1455_v39, %v1454_v58 }
 0x27d   :  { %2303 = vmatprep.subr.bf16.mxu1 %v2302_v55 }
 0x27e   :  { %1342 = vmatmul.mubr.f32.gmra.mrb[68].mxu1 %v3542_v27  ;;  %v1472_v27 = vld [vmem:[%s4021_s8 + $0x180] sm:$0xff] }
 0x27f   :  { %1347 = vmatprep.mubr.f32.mxu1 %v2515_v0  ;;  %2305 = vmatpush3.bf16.msra.mxu1 %v2304_v48 }
 0x282   :  { %1348 = vmatmul.mubr.f32.gmra.mrb[70].mxu1 %v3550_v53  ;;  %v1473_v53 = vld [vmem:[%s4021_s8 + $0x188] sm:$0xff] }
 0x283   :  { %1353 = vmatprep.mubr.f32.mxu1 %v2515_v0  ;;  %v2306_v33 = vpack.c.bf16 %v1473_v53, %v1472_v27 }
 0x285   :  { %2307 = vmatprep.subr.bf16.mxu0 %v2306_v33  ;;  %2338 = vmatprep.subr.bf16.mxu1 %v2306_v33 }
 0x286   :  { %1354 = vmatmul.mubr.f32.gmra.mrb[72].mxu1 %v3558_v18  ;;  %v1474_v18 = vld [vmem:[%s4021_s8 + $0x190] sm:$0xff] }
 0x287   :  { %1359 = vmatprep.mubr.f32.mxu1 %v2515_v0  ;;  %v3712_v32 = vpack.c.bf16 %v1475_v59, %v1474_v18 }
 0x28a   :  { %1360 = vmatmul.mubr.f32.gmra.mrb[74].mxu1 %v3565_v14  ;;  %v1459_v14 = vld [vmem:[%s4021_s8 + $0x118] sm:$0xff] }
 0x28b   :  { %1365 = vmatprep.mubr.f32.mxu1 %v2515_v0  ;;  %v3700_v0 = vpack.c.bf16 %v1457_v60, %v1456_v38  ;;  %v3717_v3 = vpack.c.bf16 %v1459_v14, %v1458_v34 }
 0x28d   :  { %2309 = vmatpush3.bf16.msra.mxu0 %v3700_v0 }
 0x28e   :  { %1366 = vmatmul.mubr.f32.gmra.mrb[76].mxu1 %v3569_v47  ;;  %2311 = vmatprep.subr.bf16.mxu0 %v3712_v32  ;;  %v1477_v47 = vld [vmem:[%s4021_s8 + $0x1a8] sm:$0xff] }
 0x28f   :  { %v3727_v4 = vpack.c.bf16 %v1477_v47, %v1476_v30 }
 0x291   :  { %2313 = vmatpush3.bf16.msra.mxu0 %v3717_v3 }
 0x292   :  { %2315 = vmatprep.subr.bf16.mxu0 %v3727_v4 }
 0x295   :  { %2317 = vmatpush3.bf16.msra.mxu0 %v3735_v8 }
 0x296   :  { %2319 = vmatprep.subr.bf16.mxu0 %v3745_v10 }
 0x299   :  { %2321 = vmatpush3.bf16.msra.mxu0 %v3753_v15 }
 0x29a   :  { %2323 = vmatprep.subr.bf16.mxu0 %v3763_v22 }
 0x29d   :  { %2325 = vmatpush3.bf16.msra.mxu0 %v3771_v25 }
 0x29e   :  { %2327 = vmatprep.subr.bf16.mxu0 %v3781_v26 }
 0x2a1   :  { %2329 = vmatpush3.bf16.msra.mxu0 %v3789_v9 }
 0x2a2   :  { %2331 = vmatprep.subr.bf16.mxu0 %v3799_v63 }
 0x2a5   :  { %2333 = vmatpush3.bf16.msra.mxu0 %v3807_v61 }
 0x2a6   :  { %2335 = vmatprep.subr.bf16.mxu0 %v3817_v43 }
 0x2a9   :  { %2337 = vmatpush3.bf16.msra.mxu0 %v3825_v21 }
 0x2fd   :  { %v1152_v37 = vpop.f32.mrb[26].mxu1 }
 0x2fe   :  { %v1153_v54 = vadd.f32 %v1152_v37, %v3836_v46  ;;  %v1154_v58 = vpop.f32.mrb[27].mxu1 }
 0x2ff   :  { %v1155_v39 = vadd.f32 %v1154_v58, %v3840_v35 }
 0x300   :  { %v1372_v2 = vmax.f32 %v1153_v54, 0.0 }
 0x301   :  { %v1373_v55 = vmax.f32 %v1155_v39, 0.0  ;;  %v1158_v23 = vpop.f32.mrb[28].mxu1 }
 0x302   :  { %v1159_v48 = vadd.f32 %v1158_v23, %v3836_v46  ;;  %v1160_v27 = vpop.f32.mrb[29].mxu1 }
 0x303   :  { %v1161_v53 = vadd.f32 %v1160_v27, %v3840_v35  ;;  %1559 = vmatprep.mubr.f32.mxu1 %v1373_v55 }
 0x304   :  { %1560 = vmatmul.mubr.f32.vlgmr.msra.gmra.mrb[78].mxu1 %v1372_v2  ;;  %v1376_v51 = vmax.f32 %v1159_v48, 0.0 }
 0x305   :  { %v1377_v44 = vmax.f32 %v1161_v53, 0.0  ;;  %v1164_v38 = vpop.f32.mrb[30].mxu1  ;;  %2346 = vmatpush3.bf16.msra.mxu1 %v3700_v0 }
 0x306   :  { %v1165_v33 = vadd.f32 %v1164_v38, %v3836_v46  ;;  %v1166_v60 = vpop.f32.mrb[31].mxu1  ;;  %2339 = vmatprep.subr.bf16.mxu1 %v3712_v32 }
 0x307   :  { %v1167_v18 = vadd.f32 %v1166_v60, %v3840_v35  ;;  %1564 = vmatprep.mubr.f32.mxu1 %v1377_v44 }
 0x308   :  { %1565 = vmatmul.mubr.f32.gmra.mrb[80].mxu1 %v1376_v51  ;;  %v1380_v14 = vmax.f32 %v1165_v33, 0.0 }
 0x309   :  { %v1381_v59 = vmax.f32 %v1167_v18, 0.0  ;;  %v1170_v34 = vpop.f32.mrb[32].mxu1  ;;  %2347 = vmatpush3.bf16.msra.mxu1 %v3717_v3 }
 0x30a   :  { %v1171_v30 = vadd.f32 %v1170_v34, %v3836_v46  ;;  %v1172_v47 = vpop.f32.mrb[33].mxu1  ;;  %2340 = vmatprep.subr.bf16.mxu1 %v3727_v4  ;;  %v3885_v34 = vrot.slane %v3832_v45, %v108_v1 }
 0x30b   :  { %v1173_v0 = vadd.f32 %v1172_v47, %v3840_v35  ;;  %1569 = vmatprep.mubr.f32.mxu1 %v1381_v59 }
 0x30c   :  { %1570 = vmatmul.mubr.f32.gmra.mrb[82].mxu1 %v1380_v14  ;;  %v1384_v6 = vmax.f32 %v1171_v30, 0.0  ;;  %v3891_v30 = vrot.slane %v3832_v45, %v112_v42 }
 0x30d   :  { %v1385_v19 = vmax.f32 %v1173_v0, 0.0  ;;  %v1176_v32 = vpop.f32.mrb[34].mxu1  ;;  %2348 = vmatpush3.bf16.msra.mxu1 %v3735_v8 }
 0x30e   :  { %v1177_v40 = vadd.f32 %v1176_v32, %v3836_v46  ;;  %v1178_v11 = vpop.f32.mrb[35].mxu1  ;;  %2341 = vmatprep.subr.bf16.mxu1 %v3745_v10 }
 0x30f   :  { %v1179_v3 = vadd.f32 %v1178_v11, %v3840_v35  ;;  %1574 = vmatprep.mubr.f32.mxu1 %v1385_v19 }
 0x310   :  { %1575 = vmatmul.mubr.f32.gmra.mrb[84].mxu1 %v1384_v6  ;;  %v1388_v49 = vmax.f32 %v1177_v40, 0.0 }
 0x311   :  { %v1389_v12 = vmax.f32 %v1179_v3, 0.0  ;;  %v1182_v4 = vpop.f32.mrb[36].mxu1  ;;  %2349 = vmatpush3.bf16.msra.mxu1 %v3753_v15 }
 0x312   :  { %v1183_v17 = vadd.f32 %v1182_v4, %v3836_v46  ;;  %v1184_v20 = vpop.f32.mrb[37].mxu1  ;;  %2342 = vmatprep.subr.bf16.mxu1 %v3763_v22 }
 0x313   :  { %v1185_v8 = vadd.f32 %v1184_v20, %v3840_v35  ;;  %1579 = vmatprep.mubr.f32.mxu1 %v1389_v12 }
 0x314   :  { %1580 = vmatmul.mubr.f32.gmra.mrb[86].mxu1 %v1388_v49  ;;  %v1392_v5 = vmax.f32 %v1183_v17, 0.0 }
 0x315   :  { %v1393_v24 = vmax.f32 %v1185_v8, 0.0  ;;  %v1188_v10 = vpop.f32.mrb[38].mxu1  ;;  %2350 = vmatpush3.bf16.msra.mxu1 %v3771_v25 }
 0x316   :  { %v1189_v52 = vadd.f32 %v1188_v10, %v3836_v46  ;;  %v1190_v50 = vpop.f32.mrb[39].mxu1  ;;  %2343 = vmatprep.subr.bf16.mxu1 %v3781_v26 }
 0x317   :  { %v1191_v15 = vadd.f32 %v1190_v50, %v3840_v35  ;;  %1584 = vmatprep.mubr.f32.mxu1 %v1393_v24 }
 0x318   :  { %1585 = vmatmul.mubr.f32.gmra.mrb[88].mxu1 %v1392_v5  ;;  %v1396_v56 = vmax.f32 %v1189_v52, 0.0 }
 0x319   :  { %v1397_v28 = vmax.f32 %v1191_v15, 0.0  ;;  %v1194_v22 = vpop.f32.mrb[40].mxu1  ;;  %2351 = vmatpush3.bf16.msra.mxu1 %v3789_v9 }
 0x31a   :  { %v1195_v29 = vadd.f32 %v1194_v22, %v3836_v46  ;;  %v1196_v7 = vpop.f32.mrb[41].mxu1  ;;  %2344 = vmatprep.subr.bf16.mxu1 %v3799_v63 }
 0x31b   :  { %v1197_v25 = vadd.f32 %v1196_v7, %v3840_v35  ;;  %1589 = vmatprep.mubr.f32.mxu1 %v1397_v28 }
 0x31c   :  { %1590 = vmatmul.mubr.f32.gmra.mrb[90].mxu1 %v1396_v56  ;;  %v1400_v31 = vmax.f32 %v1195_v29, 0.0 }
 0x31d   :  { %v1401_v16 = vmax.f32 %v1197_v25, 0.0  ;;  %v1200_v26 = vpop.f32.mrb[42].mxu1  ;;  %2352 = vmatpush3.bf16.msra.mxu1 %v3807_v61 }
 0x31e   :  { %v1201_v62 = vadd.f32 %v1200_v26, %v3836_v46  ;;  %v1202_v13 = vpop.f32.mrb[43].mxu1  ;;  %2345 = vmatprep.subr.bf16.mxu1 %v3817_v43 }
 0x31f   :  { %v1203_v9 = vadd.f32 %v1202_v13, %v3840_v35  ;;  %1594 = vmatprep.mubr.f32.mxu1 %v1401_v16 }
 0x320   :  { %1595 = vmatmul.mubr.f32.gmra.mrb[92].mxu1 %v1400_v31  ;;  %v1404_v57 = vmax.f32 %v1201_v62, 0.0 }
 0x321   :  { %v1405_v41 = vmax.f32 %v1203_v9, 0.0  ;;  %v1206_v63 = vpop.f32.mrb[44].mxu1  ;;  %2353 = vmatpush3.bf16.msra.mxu1 %v3825_v21 }
 0x322   :  { %v1207_v37 = vadd.f32 %v1206_v63, %v3836_v46  ;;  %v1208_v54 = vpop.f32.mrb[45].mxu1 }
 0x323   :  { %v1209_v61 = vadd.f32 %v1208_v54, %v3840_v35  ;;  %1599 = vmatprep.mubr.f32.mxu1 %v1405_v41 }
 0x324   :  { %1600 = vmatmul.mubr.f32.gmra.mrb[94].mxu1 %v1404_v57  ;;  %v1408_v55 = vmax.f32 %v1207_v37, 0.0 }
 0x325   :  { %v1409_v58 = vmax.f32 %v1209_v61, 0.0  ;;  %v1212_v39 = vpop.f32.mrb[46].mxu1 }
 0x326   :  { %v1213_v43 = vadd.f32 %v1212_v39, %v3836_v46  ;;  %v1214_v23 = vpop.f32.mrb[47].mxu1 }
 0x327   :  { %v1215_v2 = vadd.f32 %v1214_v23, %v3840_v35  ;;  %1604 = vmatprep.mubr.f32.mxu1 %v1409_v58 }
 0x328   :  { %1605 = vmatmul.mubr.f32.gmra.mrb[96].mxu1 %v1408_v55  ;;  %v1412_v27 = vmax.f32 %v1213_v43, 0.0 }
 0x329   :  { %v1413_v48 = vmax.f32 %v1215_v2, 0.0  ;;  %v1218_v21 = vpop.f32.mrb[48].mxu1 }
 0x32a   :  { %v1219_v53 = vadd.f32 %v1218_v21, %v3836_v46  ;;  %v1220_v44 = vpop.f32.mrb[49].mxu1 }
 0x32b   :  { %v1221_v38 = vadd.f32 %v1220_v44, %v3840_v35  ;;  %1609 = vmatprep.mubr.f32.mxu1 %v1413_v48 }
 0x32c   :  { %1610 = vmatmul.mubr.f32.gmra.mrb[98].mxu1 %v1412_v27  ;;  %v1416_v60 = vmax.f32 %v1219_v53, 0.0 }
 0x32d   :  { %v1417_v51 = vmax.f32 %v1221_v38, 0.0  ;;  %v1224_v33 = vpop.f32.mrb[50].mxu1 }
 0x32e   :  { %v1225_v18 = vadd.f32 %v1224_v33, %v3836_v46  ;;  %v1226_v59 = vpop.f32.mrb[51].mxu1 }
 0x32f   :  { %v1227_v14 = vadd.f32 %v1226_v59, %v3840_v35  ;;  %1614 = vmatprep.mubr.f32.mxu1 %v1417_v51 }
 0x330   :  { %1615 = vmatmul.mubr.f32.gmra.mrb[100].mxu1 %v1416_v60  ;;  %v1420_v19 = vmax.f32 %v1225_v18, 0.0 }
 0x331   :  { %v1421_v47 = vmax.f32 %v1227_v14, 0.0  ;;  %v1295_v0 = vpop.f32.mrb[52].mxu1 }
 0x332   :  { %v1296_v46 = vadd.f32 %v1295_v0, %v3885_v34  ;;  %v1297_v32 = vpop.f32.mrb[53].mxu1 }
 0x333   :  { %v1298_v6 = vadd.f32 %v1297_v32, %v3891_v30  ;;  %1619 = vmatprep.mubr.f32.mxu1 %v1421_v47 }
 0x334   :  { %1620 = vmatmul.mubr.f32.gmra.mrb[102].mxu1 %v1420_v19  ;;  %v1374_v35 = vmax.f32 %v1296_v46, 0.0 }
 0x335   :  { %v1375_v1 = vmax.f32 %v1298_v6, 0.0  ;;  %v1301_v40 = vpop.f32.mrb[54].mxu1 }
 0x336   :  { %v1302_v11 = vadd.f32 %v1301_v40, %v3885_v34  ;;  %v1303_v36 = vpop.f32.mrb[55].mxu1 }
 0x337   :  { %v1304_v42 = vadd.f32 %v1303_v36, %v3891_v30  ;;  %1689 = vmatprep.mubr.f32.mxu0 %v1375_v1 }
 0x338   :  { %1690 = vmatmul.mubr.f32.vlgmr.msra.gmra.mrb[52].mxu0 %v1374_v35  ;;  %v1378_v12 = vmax.f32 %v1302_v11, 0.0 }
 0x339   :  { %v1379_v45 = vmax.f32 %v1304_v42, 0.0  ;;  %v1307_v3 = vpop.f32.mrb[56].mxu1 }
 0x33a   :  { %v1308_v4 = vadd.f32 %v1307_v3, %v3885_v34  ;;  %v1309_v49 = vpop.f32.mrb[57].mxu1 }
 0x33b   :  { %v1310_v17 = vadd.f32 %v1309_v49, %v3891_v30  ;;  %1694 = vmatprep.mubr.f32.mxu0 %v1379_v45 }
 0x33c   :  { %1695 = vmatmul.mubr.f32.gmra.mrb[54].mxu0 %v1378_v12  ;;  %v1382_v24 = vmax.f32 %v1308_v4, 0.0 }
 0x33d   :  { %v1383_v20 = vmax.f32 %v1310_v17, 0.0  ;;  %v1313_v8 = vpop.f32.mrb[58].mxu1 }
 0x33e   :  { %v1314_v10 = vadd.f32 %v1313_v8, %v3885_v34  ;;  %v1315_v5 = vpop.f32.mrb[59].mxu1 }
 0x33f   :  { %v1316_v52 = vadd.f32 %v1315_v5, %v3891_v30  ;;  %1699 = vmatprep.mubr.f32.mxu0 %v1383_v20 }
 0x340   :  { %1700 = vmatmul.mubr.f32.gmra.mrb[56].mxu0 %v1382_v24  ;;  %v1386_v28 = vmax.f32 %v1314_v10, 0.0 }
 0x341   :  { %v1387_v50 = vmax.f32 %v1316_v52, 0.0  ;;  %v1319_v15 = vpop.f32.mrb[60].mxu1 }
 0x342   :  { %v1320_v22 = vadd.f32 %v1319_v15, %v3885_v34  ;;  %v1321_v56 = vpop.f32.mrb[61].mxu1 }
 0x343   :  { %v1322_v29 = vadd.f32 %v1321_v56, %v3891_v30  ;;  %1704 = vmatprep.mubr.f32.mxu0 %v1387_v50 }
 0x344   :  { %1705 = vmatmul.mubr.f32.gmra.mrb[58].mxu0 %v1386_v28  ;;  %v1390_v16 = vmax.f32 %v1320_v22, 0.0 }
 0x345   :  { %v1391_v7 = vmax.f32 %v1322_v29, 0.0  ;;  %v1325_v25 = vpop.f32.mrb[62].mxu1 }
 0x346   :  { %v1326_v26 = vadd.f32 %v1325_v25, %v3885_v34  ;;  %v1327_v31 = vpop.f32.mrb[63].mxu1 }
 0x347   :  { %v1328_v62 = vadd.f32 %v1327_v31, %v3891_v30  ;;  %1709 = vmatprep.mubr.f32.mxu0 %v1391_v7 }
 0x348   :  { %1710 = vmatmul.mubr.f32.gmra.mrb[60].mxu0 %v1390_v16  ;;  %v1394_v41 = vmax.f32 %v1326_v26, 0.0 }
 0x349   :  { %v1395_v13 = vmax.f32 %v1328_v62, 0.0  ;;  %v1331_v9 = vpop.f32.mrb[64].mxu1 }
 0x34a   :  { %v1332_v63 = vadd.f32 %v1331_v9, %v3885_v34  ;;  %v1333_v57 = vpop.f32.mrb[65].mxu1 }
 0x34b   :  { %v1334_v37 = vadd.f32 %v1333_v57, %v3891_v30  ;;  %1714 = vmatprep.mubr.f32.mxu0 %v1395_v13 }
 0x34c   :  { %1715 = vmatmul.mubr.f32.gmra.mrb[62].mxu0 %v1394_v41  ;;  %v1398_v58 = vmax.f32 %v1332_v63, 0.0 }
 0x34d   :  { %v1399_v54 = vmax.f32 %v1334_v37, 0.0  ;;  %v1337_v61 = vpop.f32.mrb[66].mxu1 }
 0x34e   :  { %v1338_v39 = vadd.f32 %v1337_v61, %v3885_v34  ;;  %v1339_v55 = vpop.f32.mrb[67].mxu1 }
 0x34f   :  { %v1340_v43 = vadd.f32 %v1339_v55, %v3891_v30  ;;  %1719 = vmatprep.mubr.f32.mxu0 %v1399_v54 }
 0x350   :  { %1720 = vmatmul.mubr.f32.gmra.mrb[64].mxu0 %v1398_v58  ;;  %v1402_v48 = vmax.f32 %v1338_v39, 0.0 }
 0x351   :  { %v1403_v23 = vmax.f32 %v1340_v43, 0.0  ;;  %v1343_v2 = vpop.f32.mrb[68].mxu1 }
 0x352   :  { %v1344_v21 = vadd.f32 %v1343_v2, %v3885_v34  ;;  %v1345_v27 = vpop.f32.mrb[69].mxu1 }
 0x353   :  { %v1346_v53 = vadd.f32 %v1345_v27, %v3891_v30  ;;  %1724 = vmatprep.mubr.f32.mxu0 %v1403_v23 }
 0x354   :  { %1725 = vmatmul.mubr.f32.gmra.mrb[66].mxu0 %v1402_v48  ;;  %v1406_v51 = vmax.f32 %v1344_v21, 0.0 }
 0x355   :  { %v1407_v44 = vmax.f32 %v1346_v53, 0.0  ;;  %v1349_v38 = vpop.f32.mrb[70].mxu1 }
 0x356   :  { %v1350_v33 = vadd.f32 %v1349_v38, %v3885_v34  ;;  %v1351_v60 = vpop.f32.mrb[71].mxu1  ;;  %v3938_v38 = vld [vmem:[%s4022_s9] ss:$0 sm:$0xff] }
 0x357   :  { %v1352_v18 = vadd.f32 %v1351_v60, %v3891_v30  ;;  %1729 = vmatprep.mubr.f32.mxu0 %v1407_v44 }
 0x358   :  { %1730 = vmatmul.mubr.f32.gmra.mrb[68].mxu0 %v1406_v51  ;;  %v1410_v47 = vmax.f32 %v1350_v33, 0.0 }
 0x359   :  { %v1411_v59 = vmax.f32 %v1352_v18, 0.0  ;;  %v1355_v14 = vpop.f32.mrb[72].mxu1 }
 0x35a   :  { %v1356_v0 = vadd.f32 %v1355_v14, %v3885_v34  ;;  %v1357_v19 = vpop.f32.mrb[73].mxu1 }
 0x35b   :  { %v1358_v46 = vadd.f32 %v1357_v19, %v3891_v30  ;;  %1734 = vmatprep.mubr.f32.mxu0 %v1411_v59 }
 0x35c   :  { %1735 = vmatmul.mubr.f32.gmra.mrb[70].mxu0 %v1410_v47  ;;  %v1414_v1 = vmax.f32 %v1356_v0, 0.0 }
 0x35d   :  { %v1415_v32 = vmax.f32 %v1358_v46, 0.0  ;;  %v1361_v6 = vpop.f32.mrb[74].mxu1 }
 0x35e   :  { %v1362_v40 = vadd.f32 %v1361_v6, %v3885_v34  ;;  %v1363_v35 = vpop.f32.mrb[75].mxu1 }
 0x35f   :  { %v1364_v11 = vadd.f32 %v1363_v35, %v3891_v30  ;;  %1739 = vmatprep.mubr.f32.mxu1 %v1415_v32 }
 0x360   :  { %1740 = vmatmul.mubr.f32.vlgmr.msra.gmra.mrb[104].mxu1 %v1414_v1  ;;  %v1418_v45 = vmax.f32 %v1362_v40, 0.0 }
 0x361   :  { %v1419_v36 = vmax.f32 %v1364_v11, 0.0  ;;  %v1367_v42 = vpop.f32.mrb[76].mxu1 }
 0x362   :  { %v1368_v3 = vadd.f32 %v1367_v42, %v3885_v34  ;;  %v1369_v12 = vpop.f32.mrb[77].mxu1 }
 0x363   :  { %v1370_v4 = vadd.f32 %v1369_v12, %v3891_v30  ;;  %1744 = vmatprep.mubr.f32.mxu1 %v1419_v36 }
 0x364   :  { %1745 = vmatmul.mubr.f32.gmra.mrb[106].mxu1 %v1418_v45  ;;  %v1422_v17 = vmax.f32 %v1368_v3, 0.0 }
 0x365   :  { %v1423_v49 = vmax.f32 %v1370_v4, 0.0 }
 0x367   :  { %1749 = vmatprep.mubr.f32.mxu1 %v1423_v49 }
 0x368   :  { %1750 = vmatmul.mubr.f32.gmra.mrb[108].mxu1 %v1422_v17 }
 0x3d7   :  { %v1940_v20 = vpop.f32.mrb[78].mxu1 }
 0x3d8   :  { %v1941_v8 = vpop.f32.mrb[79].mxu1 }
 0x3d9   :  { %v1942_v24 = vadd.f32 %v1941_v8, %v1940_v20 }
 0x3db   :  { %v1943_v10 = vpop.f32.mrb[80].mxu1  ;;  %v1562_v60 = vadd.f32 %v1942_v24, %v3938_v38 }
 0x3dc   :  { %v1944_v5 = vpop.f32.mrb[81].mxu1 }
 0x3dd   :  { %v1945_v52 = vadd.f32 %v1944_v5, %v1943_v10 }
 0x3df   :  { %v1946_v50 = vpop.f32.mrb[82].mxu1  ;;  %v1567_v0 = vadd.f32 %v1945_v52, %v3938_v38 }
 0x3e0   :  { %v1947_v15 = vpop.f32.mrb[83].mxu1 }
 0x3e1   :  { %v1948_v28 = vadd.f32 %v1947_v15, %v1946_v50 }
 0x3e3   :  { %v1949_v22 = vpop.f32.mrb[84].mxu1  ;;  %v1572_v35 = vadd.f32 %v1948_v28, %v3938_v38 }
 0x3e4   :  { %v1950_v34 = vpop.f32.mrb[85].mxu1 }
 0x3e5   :  { %v1951_v56 = vadd.f32 %v1950_v34, %v1949_v22 }
 0x3e7   :  { %v1952_v29 = vpop.f32.mrb[86].mxu1  ;;  %v1577_v4 = vadd.f32 %v1951_v56, %v3938_v38 }
 0x3e8   :  { %v1953_v30 = vpop.f32.mrb[87].mxu1 }
 0x3e9   :  { %v1954_v7 = vadd.f32 %v1953_v30, %v1952_v29 }
 0x3eb   :  { %v1955_v25 = vpop.f32.mrb[88].mxu1  ;;  %v1582_v5 = vadd.f32 %v1954_v7, %v3938_v38 }
 0x3ec   :  { %v1956_v16 = vpop.f32.mrb[89].mxu1 }
 0x3ed   :  { %v3919_v26 = vadd.f32 %v1956_v16, %v1955_v25 }
 0x3ef   :  { %v1958_v31 = vpop.f32.mrb[90].mxu1  ;;  %v1587_v56 = vadd.f32 %v3919_v26, %v3938_v38 }
 0x3f0   :  { %v1959_v62 = vpop.f32.mrb[91].mxu1 }
 0x3f1   :  { %v3921_v13 = vadd.f32 %v1959_v62, %v1958_v31 }
 0x3f3   :  { %v1961_v9 = vpop.f32.mrb[92].mxu1 }
 0x3f4   :  { %v1962_v41 = vpop.f32.mrb[93].mxu1 }
 0x3f5   :  { %v3923_v63 = vadd.f32 %v1962_v41, %v1961_v9 }
 0x3f7   :  { %v1964_v57 = vpop.f32.mrb[94].mxu1 }
 0x3f8   :  { %v1965_v37 = vpop.f32.mrb[95].mxu1 }
 0x3f9   :  { %v3925_v54 = vadd.f32 %v1965_v37, %v1964_v57  ;;  %v1592_v37 = vadd.f32 %v3921_v13, %v3938_v38 }
 0x3fb   :  { %v1967_v61 = vpop.f32.mrb[96].mxu1 }
 0x3fc   :  { %v1968_v58 = vpop.f32.mrb[97].mxu1 }
 0x3fd   :  { %v3927_v39 = vadd.f32 %v1968_v58, %v1967_v61 }
 0x3ff   :  { %v1970_v55 = vpop.f32.mrb[98].mxu1 }
 0x400   :  { %v1971_v43 = vpop.f32.mrb[99].mxu1 }
 0x401   :  { %v3929_v23 = vadd.f32 %v1971_v43, %v1970_v55 }
 0x403   :  { %v1973_v2 = vpop.f32.mrb[100].mxu1 }
 0x404   :  { %v1974_v48 = vpop.f32.mrb[101].mxu1 }
 0x405   :  { %v3931_v21 = vadd.f32 %v1974_v48, %v1973_v2 }
 0x407   :  { %v1976_v27 = vpop.f32.mrb[102].mxu1 }
 0x408   :  { %v1977_v53 = vpop.f32.mrb[103].mxu1 }
 0x409   :  { %v3933_v44 = vadd.f32 %v1977_v53, %v1976_v27  ;;  %v1597_v53 = vadd.f32 %v3923_v63, %v3938_v38 }
 0x40b   :  { %v2011_v51 = vpop.f32.mrb[52].mxu0 }
 0x40c   :  { %v2012_v33 = vpop.f32.mrb[53].mxu0 }
 0x40d   :  { %v2013_v18 = vadd.f32 %v2012_v33, %v2011_v51 }
 0x40f   :  { %v1692_v59 = vadd.f32 %v2013_v18, %v1562_v60  ;;  %v2014_v14 = vpop.f32.mrb[54].mxu0 }
 0x410   :  { %v2015_v47 = vpop.f32.mrb[55].mxu0 }
 0x411   :  { %v1755_v19 = vsub.f32 0.0, %v1692_v59  ;;  %v2016_v46 = vadd.f32 %v2015_v47, %v2014_v14 }
 0x413   :  { %v1768_v32 = vmul.f32 1.442695, %v1755_v19  ;;  %v1697_v6 = vadd.f32 %v2016_v46, %v1567_v0  ;;  %v2017_v1 = vpop.f32.mrb[56].mxu0  ;;  %v1602_v19 = vadd.f32 %v3925_v54, %v3938_v38 }
 0x414   :  { %v2018_v40 = vpop.f32.mrb[57].mxu0 }
 0x415   :  { %2436 = vpow2.f32 %v1768_v32  ;;  %v1756_v11 = vsub.f32 0.0, %v1697_v6  ;;  %v2019_v36 = vadd.f32 %v2018_v40, %v2017_v1 }
 0x417   :  { %v1770_v42 = vmul.f32 1.442695, %v1756_v11  ;;  %v1702_v45 = vadd.f32 %v2019_v36, %v1572_v35  ;;  %v2020_v3 = vpop.f32.mrb[58].mxu0 }
 0x418   :  { %v2021_v12 = vpop.f32.mrb[59].mxu0 }
 0x419   :  { %2438 = vpow2.f32 %v1770_v42  ;;  %v1757_v49 = vsub.f32 0.0, %v1702_v45  ;;  %v2022_v17 = vadd.f32 %v2021_v12, %v2020_v3  ;;  %v1607_v42 = vadd.f32 %v3927_v39, %v3938_v38 }
 0x41b   :  { %v1772_v20 = vmul.f32 1.442695, %v1757_v49  ;;  %v1707_v8 = vadd.f32 %v2022_v17, %v1577_v4  ;;  %v2023_v24 = vpop.f32.mrb[60].mxu0 }
 0x41c   :  { %v2024_v10 = vpop.f32.mrb[61].mxu0 }
 0x41d   :  { %2440 = vpow2.f32 %v1772_v20  ;;  %v1758_v52 = vsub.f32 0.0, %v1707_v8  ;;  %v2025_v50 = vadd.f32 %v2024_v10, %v2023_v24  ;;  %v1612_v24 = vadd.f32 %v3929_v23, %v3938_v38 }
 0x41f   :  { %v2437_v15 = vpop.eup %2436  ;;  %v1774_v28 = vmul.f32 1.442695, %v1758_v52  ;;  %v1712_v22 = vadd.f32 %v2025_v50, %v1582_v5  ;;  %v2026_v34 = vpop.f32.mrb[62].mxu0 }
 0x420   :  { %v1794_v29 = vadd.f32 1.0, %v2437_v15  ;;  %v2027_v30 = vpop.f32.mrb[63].mxu0 }
 0x421   :  { %2442 = vpow2.f32 %v1774_v28  ;;  %v1759_v25 = vsub.f32 0.0, %v1712_v22  ;;  %v2028_v16 = vadd.f32 %v2027_v30, %v2026_v34 }
 0x422   :  { %2444 = vrcp.f32 %v1794_v29  ;;  %v1617_v29 = vadd.f32 %v3931_v21, %v3938_v38 }
 0x423   :  { %v2439_v31 = vpop.eup %2438  ;;  %v1776_v62 = vmul.f32 1.442695, %v1759_v25  ;;  %v1717_v9 = vadd.f32 %v2028_v16, %v1587_v56  ;;  %v2029_v7 = vpop.f32.mrb[64].mxu0 }
 0x424   :  { %v1795_v41 = vadd.f32 1.0, %v2439_v31  ;;  %v2030_v57 = vpop.f32.mrb[65].mxu0 }
 0x425   :  { %2446 = vpow2.f32 %v1776_v62  ;;  %v1760_v61 = vsub.f32 0.0, %v1717_v9  ;;  %v2031_v58 = vadd.f32 %v2030_v57, %v2029_v7 }
 0x426   :  { %2448 = vrcp.f32 %v1795_v41  ;;  %v1622_v41 = vadd.f32 %v3933_v44, %v3938_v38 }
 0x427   :  { %v2441_v55 = vpop.eup %2440  ;;  %v1778_v43 = vmul.f32 1.442695, %v1760_v61  ;;  %v1722_v26 = vadd.f32 %v2031_v58, %v1592_v37  ;;  %v2032_v2 = vpop.f32.mrb[66].mxu0 }
 0x428   :  { %v1796_v48 = vadd.f32 1.0, %v2441_v55  ;;  %v2033_v27 = vpop.f32.mrb[67].mxu0 }
 0x429   :  { %2450 = vpow2.f32 %v1778_v43  ;;  %v1761_v51 = vsub.f32 0.0, %v1722_v26  ;;  %v2034_v33 = vadd.f32 %v2033_v27, %v2032_v2 }
 0x42a   :  { %2452 = vrcp.f32 %v1796_v48 }
 0x42b   :  { %v2443_v60 = vpop.eup %2442  ;;  %v1780_v18 = vmul.f32 1.442695, %v1761_v51  ;;  %v1727_v13 = vadd.f32 %v2034_v33, %v1597_v53  ;;  %v2035_v59 = vpop.f32.mrb[68].mxu0 }
 0x42c   :  { %v2445_v14 = vpop.eup %2444  ;;  %v1797_v47 = vadd.f32 1.0, %v2443_v60  ;;  %v2036_v0 = vpop.f32.mrb[69].mxu0 }
 0x42d   :  { %1833 = vst.msk [vmem:[%s4023_s10] sm:$0xff] %vm118_vm0, %v2445_v14  ;;  %2454 = vpow2.f32 %v1780_v18  ;;  %v1762_v63 = vsub.f32 0.0, %v1727_v13  ;;  %v2037_v46 = vadd.f32 %v2036_v0, %v2035_v59 }
 0x42e   :  { %2456 = vrcp.f32 %v1797_v47 }
 0x42f   :  { %v2447_v32 = vpop.eup %2446  ;;  %v1782_v6 = vmul.f32 1.442695, %v1762_v63  ;;  %v1732_v1 = vadd.f32 %v2037_v46, %v1602_v19  ;;  %v2038_v40 = vpop.f32.mrb[70].mxu0 }
 0x430   :  { %v2449_v35 = vpop.eup %2448  ;;  %v1798_v11 = vadd.f32 1.0, %v2447_v32  ;;  %v2039_v36 = vpop.f32.mrb[71].mxu0 }
 0x431   :  { %1834 = vst.msk [vmem:[%s4023_s10 + $0x8] sm:$0xff] %vm118_vm0, %v2449_v35  ;;  %2458 = vpow2.f32 %v1782_v6  ;;  %v1763_v54 = vsub.f32 0.0, %v1732_v1  ;;  %v2040_v45 = vadd.f32 %v2039_v36, %v2038_v40 }
 0x432   :  { %2460 = vrcp.f32 %v1798_v11 }
 0x433   :  { %v2451_v3 = vpop.eup %2450  ;;  %v1784_v12 = vmul.f32 1.442695, %v1763_v54  ;;  %v1737_v4 = vadd.f32 %v2040_v45, %v1607_v42  ;;  %v2041_v49 = vpop.f32.mrb[104].mxu1 }
 0x434   :  { %v2453_v17 = vpop.eup %2452  ;;  %v1799_v20 = vadd.f32 1.0, %v2451_v3  ;;  %v2042_v8 = vpop.f32.mrb[105].mxu1 }
 0x435   :  { %1835 = vst.msk [vmem:[%s4023_s10 + $0x10] sm:$0xff] %vm118_vm0, %v2453_v17  ;;  %2462 = vpow2.f32 %v1784_v12  ;;  %v1764_v39 = vsub.f32 0.0, %v1737_v4  ;;  %v2043_v10 = vadd.f32 %v2042_v8, %v2041_v49 }
 0x436   :  { %2464 = vrcp.f32 %v1799_v20 }
 0x437   :  { %v2455_v5 = vpop.eup %2454  ;;  %v1786_v52 = vmul.f32 1.442695, %v1764_v39  ;;  %v1742_v50 = vadd.f32 %v2043_v10, %v1612_v24  ;;  %v2044_v15 = vpop.f32.mrb[106].mxu1 }
 0x438   :  { %v2457_v28 = vpop.eup %2456  ;;  %v1800_v22 = vadd.f32 1.0, %v2455_v5  ;;  %v2045_v34 = vpop.f32.mrb[107].mxu1 }
 0x439   :  { %1836 = vst.msk [vmem:[%s4023_s10 + $0x18] sm:$0xff] %vm118_vm0, %v2457_v28  ;;  %2466 = vpow2.f32 %v1786_v52  ;;  %v1765_v23 = vsub.f32 0.0, %v1742_v50  ;;  %v2046_v30 = vadd.f32 %v2045_v34, %v2044_v15 }
 0x43a   :  { %2468 = vrcp.f32 %v1800_v22 }
 0x43b   :  { %v2459_v56 = vpop.eup %2458  ;;  %v1788_v25 = vmul.f32 1.442695, %v1765_v23  ;;  %v1747_v16 = vadd.f32 %v2046_v30, %v1617_v29  ;;  %v2047_v31 = vpop.f32.mrb[108].mxu1 }
 0x43c   :  { %v2461_v62 = vpop.eup %2460  ;;  %v1801_v9 = vadd.f32 1.0, %v2459_v56  ;;  %v2048_v7 = vpop.f32.mrb[109].mxu1 }
 0x43d   :  { %1837 = vst.msk [vmem:[%s4023_s10 + $0x20] sm:$0xff] %vm118_vm0, %v2461_v62  ;;  %2470 = vpow2.f32 %v1788_v25  ;;  %v1766_v21 = vsub.f32 0.0, %v1747_v16  ;;  %v2049_v57 = vadd.f32 %v2048_v7, %v2047_v31 }
 0x43e   :  { %2472 = vrcp.f32 %v1801_v9 }
 0x43f   :  { %v2463_v37 = vpop.eup %2462  ;;  %v1790_v61 = vmul.f32 1.442695, %v1766_v21  ;;  %v1752_v58 = vadd.f32 %v2049_v57, %v1622_v41 }
 0x440   :  { %v2465_v55 = vpop.eup %2464  ;;  %v1802_v43 = vadd.f32 1.0, %v2463_v37 }
 0x441   :  { %1838 = vst.msk [vmem:[%s4023_s10 + $0x28] sm:$0xff] %vm118_vm0, %v2465_v55  ;;  %2474 = vpow2.f32 %v1790_v61  ;;  %v1767_v44 = vsub.f32 0.0, %v1752_v58 }
 0x442   :  { %2476 = vrcp.f32 %v1802_v43 }
 0x443   :  { %v2467_v38 = vpop.eup %2466  ;;  %v1792_v26 = vmul.f32 1.442695, %v1767_v44 }
 0x444   :  { %v2469_v2 = vpop.eup %2468  ;;  %v1803_v48 = vadd.f32 1.0, %v2467_v38 }
 0x445   :  { %1839 = vst.msk [vmem:[%s4023_s10 + $0x30] sm:$0xff] %vm118_vm0, %v2469_v2  ;;  %2478 = vpow2.f32 %v1792_v26 }
 0x446   :  { %2480 = vrcp.f32 %v1803_v48 }
 0x447   :  { %v2471_v27 = vpop.eup %2470 }
 0x448   :  { %v2473_v53 = vpop.eup %2472  ;;  %v1804_v51 = vadd.f32 1.0, %v2471_v27 }
 0x449   :  { %1840 = vst.msk [vmem:[%s4023_s10 + $0x38] sm:$0xff] %vm118_vm0, %v2473_v53 }
 0x44a   :  { %2482 = vrcp.f32 %v1804_v51 }
 0x44b   :  { %v2475_v33 = vpop.eup %2474 }
 0x44c   :  { %v2477_v60 = vpop.eup %2476  ;;  %v1805_v18 = vadd.f32 1.0, %v2475_v33 }
 0x44d   :  { %1841 = vst.msk [vmem:[%s4023_s10 + $0x40] sm:$0xff] %vm118_vm0, %v2477_v60 }
 0x44e   :  { %2484 = vrcp.f32 %v1805_v18 }
 0x44f   :  { %v2479_v13 = vpop.eup %2478 }
 0x450   :  { %v2481_v59 = vpop.eup %2480  ;;  %v1806_v14 = vadd.f32 1.0, %v2479_v13 }
 0x451   :  { %1842 = vst.msk [vmem:[%s4023_s10 + $0x48] sm:$0xff] %vm118_vm0, %v2481_v59 }
 0x452   :  { %2486 = vrcp.f32 %v1806_v14 }
 0x454   :  { %v2483_v47 = vpop.eup %2482 }
 0x455   :  { %1843 = vst.msk [vmem:[%s4023_s10 + $0x50] sm:$0xff] %vm118_vm0, %v2483_v47 }
 0x458   :  { %v2485_v0 = vpop.eup %2484 }
 0x459   :  { %1844 = vst.msk [vmem:[%s4023_s10 + $0x58] sm:$0xff] %vm118_vm0, %v2485_v0 }
 0x45c   :  { %v2487_v19 = vpop.eup %2486 }
 0x45d   :  { %1845 = vst.msk [vmem:[%s4023_s10 + $0x60] sm:$0xff] %vm118_vm0, %v2487_v19 }
 0x45e   :  { %1880 = vsyncpa [#allocation3], 1 }

</bundles_post_ra>
